<compile_context>
chip_gen: v7x
topology: tpu7x:2x2x1
jax: 0.10.0
libtpu: 0.0.40
codegen_flags: <defaults>
</compile_context>

<pallas_src>
import functools
import math

import jax
import jax.numpy as jnp
from jax.experimental import pallas as pl
from jax.experimental.pallas import tpu as pltpu

KH = KW = 3  # 3x3 conv, stride 1, padding 1 ('same')


def _round_up(x, m):
    return (x + m - 1) // m * m


def _lane_coords(tblk, H, W):
    """Per-lane within-image flat index q = h*W + w and column index w.

    Lane order of a tile is (image, h, w) with w fastest; tiles hold whole images.
    Power-of-two H*W / W (the common SNN case) uses bit masks only.
    """
    p = jax.lax.broadcasted_iota(jnp.int32, (1, tblk), 1)
    hw = H * W
    if (hw & (hw - 1)) == 0 and (W & (W - 1)) == 0:
        q = p & (hw - 1)
        ww = p & (W - 1)
    else:
        q = p % hw
        ww = q % W
    return q, ww


def _conv3x3_tile(w_ref, x_ref, H, W):
    """3x3 'same' conv of one tile as 9 masked, lane-shifted K=Cin accumulating dots.

    w_ref: [KH*KW, Cout, Cin]  tap-major packed weights (f32)
    x_ref: [Cin, TBLK]         flat (image, h, w) lane-major tile (bf16 or f32)
    returns: [Cout, TBLK] f32 pre-BN conv output for this tile.

    Tap (kh, kw) of output lane p lives at lane p + (kh-1)*W + (kw-1) of the SAME image.
    Lanes whose tap would fall outside their own image are zero-masked, so any value the
    lane shift drags across an image/tile boundary is never used.
    """
    x = x_ref[...].astype(jnp.float32)          # all VPU work in f32 (v5e-friendly)
    q, ww = _lane_coords(x.shape[1], H, W)
    hw = H * W
    acc = None
    for kh in range(KH):
        for kw in range(KW):
            off = (kh - 1) * W + (kw - 1)
            tap = x if off == 0 else jnp.roll(x, -off, axis=1)
            ok = None
            if kh == 0:
                ok = q >= W                      # needs row h-1 -> only valid for h >= 1
            elif kh == KH - 1:
                ok = q < hw - W                  # needs row h+1 -> only valid for h <= H-2
            if kw == 0:
                c = ww >= 1                      # needs col w-1 -> only valid for w >= 1
                ok = c if ok is None else ok & c
            elif kw == KW - 1:
                c = ww <= W - 2                  # needs col w+1 -> only valid for w <= W-2
                ok = c if ok is None else ok & c
            if ok is not None:
                tap = jnp.where(ok, tap, jnp.zeros((), tap.dtype))
            d = jnp.dot(w_ref[kh * KW + kw], tap, preferred_element_type=jnp.float32)
            acc = d if acc is None else acc + d
    return acc


def conv_stats_kernel(w_ref, x_ref, stats_ref, *, H, W):
    """Pass 1: per-tile per-channel sum / sum-of-squares of the conv output (no y to HBM)."""
    acc = _conv3x3_tile(w_ref, x_ref, H, W)                        # [Cout, TBLK] f32
    stats_ref[0, :, 0:1] = jnp.sum(acc, axis=1, keepdims=True)     # XLU lane reductions
    stats_ref[0, :, 1:2] = jnp.sum(acc * acc, axis=1, keepdims=True)


def conv_bn_kernel(ss_ref, w_ref, x_ref, o_ref, *, H, W):
    """Pass 2: recompute conv, apply fused BN scale/shift, store output in final layout."""
    acc = _conv3x3_tile(w_ref, x_ref, H, W)                        # [Cout, TBLK] f32
    y = acc * ss_ref[:, 0:1] + ss_ref[:, 1:2]
    hw = H * W
    for ni in range(o_ref.shape[0]):       # per-image lane-dense [Cout, H*W] stores
        o_ref[ni] = y[:, ni * hw:(ni + 1) * hw].astype(o_ref.dtype)


def layer_t_wrapper_forward(x_tbchw, w, b, gamma, beta, eps=1e-5,
                            compute_dtype=jnp.bfloat16, target_lanes=4096):
    """Forward of LayerTWrapper(Conv2d 3x3 'same' + bias, training-mode BN) on [T,B,C,H,W]."""
    # The conv bias is a mathematical no-op here: training-mode BN subtracts the
    # per-channel mean, cancelling any per-channel constant exactly.  (It must be
    # reinstated if this wrapper is reused with eval-mode / running-stats BN.)
    del b

    T, B, Cin, H, W = x_tbchw.shape
    Cout = w.shape[0]
    N = T * B
    HW = H * W
    M = N * HW

    # Whole images per tile, targeting ~target_lanes lanes (review: 2048-4096; footprint
    # is <1 MiB double-buffered, safe on v5e/v6e/v7x alike).  Lane width kept a multiple
    # of 128 so the BlockSpec tiling rule holds.
    ipb = min(N, max(1, target_lanes // max(1, HW)))
    lane_q = 128 // math.gcd(HW, 128)
    ipb = _round_up(ipb, lane_q)
    n_pad = _round_up(N, ipb)
    grid_m = n_pad // ipb
    tblk = ipb * HW

    # --- light input prep: the ONLY XLA copy of x (channel-major [+ bf16 cast]) -------
    x_cm = jnp.transpose(x_tbchw.reshape(N, Cin, HW), (1, 0, 2)).reshape(Cin, M)
    if n_pad != N:
        # Zero images convolve to exactly 0 and contribute 0 to the statistics (the true
        # element count M is used below); their outputs are sliced off at the end.
        x_cm = jnp.pad(x_cm, ((0, 0), (0, (n_pad - N) * HW)))
    x_cm = x_cm.astype(compute_dtype)
    # Tap-major packed weights [kh*KW + kw, Cout, Cin]; tiny, kept in f32.
    w_taps = jnp.transpose(w, (2, 3, 0, 1)).reshape(KH * KW, Cout, Cin).astype(jnp.float32)

    # --- pass 1: conv -> packed per-tile channel statistics ---------------------------
    stats = pl.pallas_call(
        functools.partial(conv_stats_kernel, H=H, W=W),
        out_shape=jax.ShapeDtypeStruct((grid_m, Cout, 2), jnp.float32),
        grid=(grid_m,),
        in_specs=[
            pl.BlockSpec((KH * KW, Cout, Cin), lambda i: (0, 0, 0)),
            pl.BlockSpec((Cin, tblk), lambda i: (0, i)),
        ],
        out_specs=pl.BlockSpec((1, Cout, 2), lambda i: (i, 0, 0)),
        compiler_params=pltpu.CompilerParams(dimension_semantics=("parallel",)),
    )(w_taps, x_cm)

    # --- tiny cross-tile fold: BN -> one fused per-channel scale/shift (plain JAX) ----
    total = jnp.sum(stats[:, :, 0], axis=0)
    total_sq = jnp.sum(stats[:, :, 1], axis=0)
    mean = total / M
    # TODO(synk): for very large T*B*H*W, combine per-tile (mean, M2) Welford-style
    # instead of raw sum / sum-of-squares to avoid cancellation; fine at these sizes.
    var = jnp.maximum(total_sq / M - mean * mean, 0.0)        # biased (training-mode) var
    inv = jax.lax.rsqrt(var + eps)
    scale = gamma.astype(jnp.float32) * inv
    shift = beta.astype(jnp.float32) - mean * scale
    ss = jnp.stack([scale, shift], axis=1)                    # [Cout, 2] packed epilogue

    # --- pass 2: recompute conv, normalize, write output in its final layout ----------
    # (H*W = 256 here, a multiple of 128 -> unmasked lane-dense stores; for H*W not a
    #  multiple of 128 this layout stays correct, just with masked stores.)
    out = pl.pallas_call(
        functools.partial(conv_bn_kernel, H=H, W=W),
        out_shape=jax.ShapeDtypeStruct((n_pad, Cout, HW), jnp.float32),
        grid=(grid_m,),
        in_specs=[
            pl.BlockSpec((Cout, 2), lambda i: (0, 0)),
            pl.BlockSpec((KH * KW, Cout, Cin), lambda i: (0, 0, 0)),
            pl.BlockSpec((Cin, tblk), lambda i: (0, i)),
        ],
        out_specs=pl.BlockSpec((ipb, Cout, HW), lambda i: (i, 0, 0)),
        compiler_params=pltpu.CompilerParams(dimension_semantics=("parallel",)),
    )(ss, w_taps, x_cm)

    if n_pad != N:
        out = out[:N]
    # (N, Cout, H*W) -> (T, B, Cout, H, W) is metadata-only: no post-kernel transpose.
    return out.reshape(T, B, Cout, H, W)


def _reference_forward(x_tbchw, w, b, gamma, beta, eps=1e-5):
    """Pure-JAX reference mirroring the PyTorch module (includes the conv bias)."""
    T, B, C, H, W = x_tbchw.shape
    x_flat = x_tbchw.reshape(T * B, C, H, W)
    y_flat = jax.lax.conv_general_dilated(
        x_flat, w, window_strides=(1, 1), padding="SAME",
        dimension_numbers=("NCHW", "OIHW", "NCHW"),
        precision=jax.lax.Precision.HIGHEST)
    y_flat = y_flat + b[None, :, None, None]
    Cout = w.shape[0]
    y = y_flat.reshape(T, B, Cout, H, W)
    mean = jnp.mean(y, axis=(0, 1, 3, 4), keepdims=True)
    var = jnp.mean((y - mean) ** 2, axis=(0, 1, 3, 4), keepdims=True)
    return (y - mean) * jax.lax.rsqrt(var + eps) \
        * gamma[None, None, :, None, None] + beta[None, None, :, None, None]


if __name__ == "__main__":
    T, B, Cin, Cout, H, W = 2, 2, 4, 8, 16, 16

    key = jax.random.PRNGKey(0)
    kx, kw, kb, kg, kbt = jax.random.split(key, 5)

    x = jax.random.normal(kx, (T, B, Cin, H, W), dtype=jnp.float32)
    fan_in = Cin * KH * KW
    bound = 1.0 / (fan_in ** 0.5)
    w = jax.random.uniform(kw, (Cout, Cin, KH, KW), minval=-bound, maxval=bound,
                           dtype=jnp.float32)
    b = jax.random.uniform(kb, (Cout,), minval=-bound, maxval=bound, dtype=jnp.float32)
    gamma = 1.0 + 0.1 * jax.random.normal(kg, (Cout,), dtype=jnp.float32)
    beta = 0.1 * jax.random.normal(kbt, (Cout,), dtype=jnp.float32)

    y_ref = _reference_forward(x, w, b, gamma, beta)

    # Algorithmic check with f32-resident x (tolerance covers TPU matmul rounding only;
    # any indexing / masking / layout bug would produce O(1) errors).
    fwd_f32 = jax.jit(functools.partial(layer_t_wrapper_forward,
                                        compute_dtype=jnp.float32))
    y_f32 = jax.block_until_ready(fwd_f32(x, w, b, gamma, beta))
    assert y_f32.shape == (T, B, Cout, H, W)
    err_f32 = float(jnp.max(jnp.abs(y_f32 - y_ref)))
    assert err_f32 < 3e-2, f"f32 kernel mismatch (max abs err {err_f32})"

    # Performance path: bf16 HBM-resident x (f32 accumulation / BN math throughout).
    fwd_bf16 = jax.jit(functools.partial(layer_t_wrapper_forward,
                                         compute_dtype=jnp.bfloat16))
    y_bf16 = jax.block_until_ready(fwd_bf16(x, w, b, gamma, beta))
    assert y_bf16.shape == (T, B, Cout, H, W)
    err_bf16 = float(jnp.max(jnp.abs(y_bf16 - y_ref)))
    assert err_bf16 < 1.5e-1, f"bf16 kernel mismatch (max abs err {err_bf16})"

    print("KERNEL_OK")
</pallas_src>

<mosaic_0001>
module attributes {stable_mosaic.version = 11 : i64} {
  func.func @conv_stats_kernel(%arg0: i32, %arg1: memref<9x8x4xf32, #tpu.memory_space<vmem>>, %arg2: memref<4x1024xf32, #tpu.memory_space<vmem>>, %arg3: memref<1x8x2xf32, #tpu.memory_space<vmem>>) attributes {dimension_semantics = [#tpu.dimension_semantics<parallel>], iteration_bounds = array<i64: 1>, scalar_prefetch = 0 : i64, scratch_operands = 0 : i64, tpu.core_type = #tpu.core_type<tc>, window_params = [{pipeline_mode = #tpu.pipeline_mode<synchronous>, transform_indices = @transform_0, window_bounds = array<i64: 9, 8, 4>}, {transform_indices = @transform_1, window_bounds = array<i64: 4, 1024>}, {transform_indices = @transform_2, window_bounds = array<i64: 1, 8, 2>}]} {
    %c0 = arith.constant 0 : index
    %c0_0 = arith.constant 0 : index
    %0 = vector.load %arg2[%c0, %c0_0] : memref<4x1024xf32, #tpu.memory_space<vmem>>, vector<4x1024xf32>
    %1 = tpu.iota {dimensions = array<i32: 1>} : vector<1x1024xi32>
    %c255_i32 = arith.constant 255 : i32
    %2 = vector.broadcast %c255_i32 : i32 to vector<1x1024xi32>
    %3 = arith.andi %1, %2 : vector<1x1024xi32>
    %c15_i32 = arith.constant 15 : i32
    %4 = vector.broadcast %c15_i32 : i32 to vector<1x1024xi32>
    %5 = arith.andi %1, %4 : vector<1x1024xi32>
    %6 = vector.extract_strided_slice %0 {offsets = [0, 1007], sizes = [4, 17], strides = [1, 1]} : vector<4x1024xf32> to vector<4x17xf32>
    %7 = vector.extract_strided_slice %0 {offsets = [0, 0], sizes = [4, 1007], strides = [1, 1]} : vector<4x1024xf32> to vector<4x1007xf32>
    %8 = tpu.concatenate %6, %7 in 1 : vector<4x17xf32>, vector<4x1007xf32> -> vector<4x1024xf32>
    %c16_i32 = arith.constant 16 : i32
    %9 = vector.broadcast %c16_i32 : i32 to vector<1x1024xi32>
    %10 = arith.cmpi sge, %3, %9 : vector<1x1024xi32>
    %c1_i32 = arith.constant 1 : i32
    %11 = vector.broadcast %c1_i32 : i32 to vector<1x1024xi32>
    %12 = arith.cmpi sge, %5, %11 : vector<1x1024xi32>
    %13 = arith.andi %10, %12 : vector<1x1024xi1>
    %cst = arith.constant 0.000000e+00 : f32
    %14 = vector.shape_cast %13 : vector<1x1024xi1> to vector<1x1024xi1>
    %15 = vector.broadcast %14 : vector<1x1024xi1> to vector<4x1024xi1>
    %16 = vector.broadcast %cst : f32 to vector<4x1024xf32>
    %17 = arith.select %15, %8, %16 : vector<4x1024xi1>, vector<4x1024xf32>
    %c0_1 = arith.constant 0 : index
    %c0_2 = arith.constant 0 : index
    %c0_3 = arith.constant 0 : index
    %18 = vector.load %arg1[%c0_1, %c0_2, %c0_3] : memref<9x8x4xf32, #tpu.memory_space<vmem>>, vector<1x8x4xf32>
    %19 = vector.shape_cast %18 : vector<1x8x4xf32> to vector<8x4xf32>
    %cst_4 = arith.constant dense<0.000000e+00> : vector<8x1024xf32>
    %20 = tpu.matmul %19, %17, %cst_4 {dimension_numbers = #tpu.dot_dimension_numbers<[1], [0], [0], [1], [0, 0, 1, 1], [], []>} : vector<8x4xf32>, vector<4x1024xf32>, vector<8x1024xf32> -> vector<8x1024xf32>
    %21 = vector.extract_strided_slice %0 {offsets = [0, 1008], sizes = [4, 16], strides = [1, 1]} : vector<4x1024xf32> to vector<4x16xf32>
    %22 = vector.extract_strided_slice %0 {offsets = [0, 0], sizes = [4, 1008], strides = [1, 1]} : vector<4x1024xf32> to vector<4x1008xf32>
    %23 = tpu.concatenate %21, %22 in 1 : vector<4x16xf32>, vector<4x1008xf32> -> vector<4x1024xf32>
    %c16_i32_5 = arith.constant 16 : i32
    %24 = vector.broadcast %c16_i32_5 : i32 to vector<1x1024xi32>
    %25 = arith.cmpi sge, %3, %24 : vector<1x1024xi32>
    %cst_6 = arith.constant 0.000000e+00 : f32
    %26 = vector.shape_cast %25 : vector<1x1024xi1> to vector<1x1024xi1>
    %27 = vector.broadcast %26 : vector<1x1024xi1> to vector<4x1024xi1>
    %28 = vector.broadcast %cst_6 : f32 to vector<4x1024xf32>
    %29 = arith.select %27, %23, %28 : vector<4x1024xi1>, vector<4x1024xf32>
    %c1 = arith.constant 1 : index
    %c0_7 = arith.constant 0 : index
    %c0_8 = arith.constant 0 : index
    %30 = vector.load %arg1[%c1, %c0_7, %c0_8] : memref<9x8x4xf32, #tpu.memory_space<vmem>>, vector<1x8x4xf32>
    %31 = vector.shape_cast %30 : vector<1x8x4xf32> to vector<8x4xf32>
    %cst_9 = arith.constant dense<0.000000e+00> : vector<8x1024xf32>
    %32 = tpu.matmul %31, %29, %cst_9 {dimension_numbers = #tpu.dot_dimension_numbers<[1], [0], [0], [1], [0, 0, 1, 1], [], []>} : vector<8x4xf32>, vector<4x1024xf32>, vector<8x1024xf32> -> vector<8x1024xf32>
    %33 = arith.addf %20, %32 : vector<8x1024xf32>
    %34 = vector.extract_strided_slice %0 {offsets = [0, 1009], sizes = [4, 15], strides = [1, 1]} : vector<4x1024xf32> to vector<4x15xf32>
    %35 = vector.extract_strided_slice %0 {offsets = [0, 0], sizes = [4, 1009], strides = [1, 1]} : vector<4x1024xf32> to vector<4x1009xf32>
    %36 = tpu.concatenate %34, %35 in 1 : vector<4x15xf32>, vector<4x1009xf32> -> vector<4x1024xf32>
    %c16_i32_10 = arith.constant 16 : i32
    %37 = vector.broadcast %c16_i32_10 : i32 to vector<1x1024xi32>
    %38 = arith.cmpi sge, %3, %37 : vector<1x1024xi32>
    %c14_i32 = arith.constant 14 : i32
    %39 = vector.broadcast %c14_i32 : i32 to vector<1x1024xi32>
    %40 = arith.cmpi sle, %5, %39 : vector<1x1024xi32>
    %41 = arith.andi %38, %40 : vector<1x1024xi1>
    %cst_11 = arith.constant 0.000000e+00 : f32
    %42 = vector.shape_cast %41 : vector<1x1024xi1> to vector<1x1024xi1>
    %43 = vector.broadcast %42 : vector<1x1024xi1> to vector<4x1024xi1>
    %44 = vector.broadcast %cst_11 : f32 to vector<4x1024xf32>
    %45 = arith.select %43, %36, %44 : vector<4x1024xi1>, vector<4x1024xf32>
    %c2 = arith.constant 2 : index
    %c0_12 = arith.constant 0 : index
    %c0_13 = arith.constant 0 : index
    %46 = vector.load %arg1[%c2, %c0_12, %c0_13] : memref<9x8x4xf32, #tpu.memory_space<vmem>>, vector<1x8x4xf32>
    %47 = vector.shape_cast %46 : vector<1x8x4xf32> to vector<8x4xf32>
    %cst_14 = arith.constant dense<0.000000e+00> : vector<8x1024xf32>
    %48 = tpu.matmul %47, %45, %cst_14 {dimension_numbers = #tpu.dot_dimension_numbers<[1], [0], [0], [1], [0, 0, 1, 1], [], []>} : vector<8x4xf32>, vector<4x1024xf32>, vector<8x1024xf32> -> vector<8x1024xf32>
    %49 = arith.addf %33, %48 : vector<8x1024xf32>
    %50 = vector.extract_strided_slice %0 {offsets = [0, 1023], sizes = [4, 1], strides = [1, 1]} : vector<4x1024xf32> to vector<4x1xf32>
    %51 = vector.extract_strided_slice %0 {offsets = [0, 0], sizes = [4, 1023], strides = [1, 1]} : vector<4x1024xf32> to vector<4x1023xf32>
    %52 = tpu.concatenate %50, %51 in 1 : vector<4x1xf32>, vector<4x1023xf32> -> vector<4x1024xf32>
    %c1_i32_15 = arith.constant 1 : i32
    %53 = vector.broadcast %c1_i32_15 : i32 to vector<1x1024xi32>
    %54 = arith.cmpi sge, %5, %53 : vector<1x1024xi32>
    %cst_16 = arith.constant 0.000000e+00 : f32
    %55 = vector.shape_cast %54 : vector<1x1024xi1> to vector<1x1024xi1>
    %56 = vector.broadcast %55 : vector<1x1024xi1> to vector<4x1024xi1>
    %57 = vector.broadcast %cst_16 : f32 to vector<4x1024xf32>
    %58 = arith.select %56, %52, %57 : vector<4x1024xi1>, vector<4x1024xf32>
    %c3 = arith.constant 3 : index
    %c0_17 = arith.constant 0 : index
    %c0_18 = arith.constant 0 : index
    %59 = vector.load %arg1[%c3, %c0_17, %c0_18] : memref<9x8x4xf32, #tpu.memory_space<vmem>>, vector<1x8x4xf32>
    %60 = vector.shape_cast %59 : vector<1x8x4xf32> to vector<8x4xf32>
    %cst_19 = arith.constant dense<0.000000e+00> : vector<8x1024xf32>
    %61 = tpu.matmul %60, %58, %cst_19 {dimension_numbers = #tpu.dot_dimension_numbers<[1], [0], [0], [1], [0, 0, 1, 1], [], []>} : vector<8x4xf32>, vector<4x1024xf32>, vector<8x1024xf32> -> vector<8x1024xf32>
    %62 = arith.addf %49, %61 : vector<8x1024xf32>
    %c4 = arith.constant 4 : index
    %c0_20 = arith.constant 0 : index
    %c0_21 = arith.constant 0 : index
    %63 = vector.load %arg1[%c4, %c0_20, %c0_21] : memref<9x8x4xf32, #tpu.memory_space<vmem>>, vector<1x8x4xf32>
    %64 = vector.shape_cast %63 : vector<1x8x4xf32> to vector<8x4xf32>
    %cst_22 = arith.constant dense<0.000000e+00> : vector<8x1024xf32>
    %65 = tpu.matmul %64, %0, %cst_22 {dimension_numbers = #tpu.dot_dimension_numbers<[1], [0], [0], [1], [0, 0, 1, 1], [], []>} : vector<8x4xf32>, vector<4x1024xf32>, vector<8x1024xf32> -> vector<8x1024xf32>
    %66 = arith.addf %62, %65 : vector<8x1024xf32>
    %67 = vector.extract_strided_slice %0 {offsets = [0, 1], sizes = [4, 1023], strides = [1, 1]} : vector<4x1024xf32> to vector<4x1023xf32>
    %68 = vector.extract_strided_slice %0 {offsets = [0, 0], sizes = [4, 1], strides = [1, 1]} : vector<4x1024xf32> to vector<4x1xf32>
    %69 = tpu.concatenate %67, %68 in 1 : vector<4x1023xf32>, vector<4x1xf32> -> vector<4x1024xf32>
    %c14_i32_23 = arith.constant 14 : i32
    %70 = vector.broadcast %c14_i32_23 : i32 to vector<1x1024xi32>
    %71 = arith.cmpi sle, %5, %70 : vector<1x1024xi32>
    %cst_24 = arith.constant 0.000000e+00 : f32
    %72 = vector.shape_cast %71 : vector<1x1024xi1> to vector<1x1024xi1>
    %73 = vector.broadcast %72 : vector<1x1024xi1> to vector<4x1024xi1>
    %74 = vector.broadcast %cst_24 : f32 to vector<4x1024xf32>
    %75 = arith.select %73, %69, %74 : vector<4x1024xi1>, vector<4x1024xf32>
    %c5 = arith.constant 5 : index
    %c0_25 = arith.constant 0 : index
    %c0_26 = arith.constant 0 : index
    %76 = vector.load %arg1[%c5, %c0_25, %c0_26] : memref<9x8x4xf32, #tpu.memory_space<vmem>>, vector<1x8x4xf32>
    %77 = vector.shape_cast %76 : vector<1x8x4xf32> to vector<8x4xf32>
    %cst_27 = arith.constant dense<0.000000e+00> : vector<8x1024xf32>
    %78 = tpu.matmul %77, %75, %cst_27 {dimension_numbers = #tpu.dot_dimension_numbers<[1], [0], [0], [1], [0, 0, 1, 1], [], []>} : vector<8x4xf32>, vector<4x1024xf32>, vector<8x1024xf32> -> vector<8x1024xf32>
    %79 = arith.addf %66, %78 : vector<8x1024xf32>
    %80 = vector.extract_strided_slice %0 {offsets = [0, 15], sizes = [4, 1009], strides = [1, 1]} : vector<4x1024xf32> to vector<4x1009xf32>
    %81 = vector.extract_strided_slice %0 {offsets = [0, 0], sizes = [4, 15], strides = [1, 1]} : vector<4x1024xf32> to vector<4x15xf32>
    %82 = tpu.concatenate %80, %81 in 1 : vector<4x1009xf32>, vector<4x15xf32> -> vector<4x1024xf32>
    %c240_i32 = arith.constant 240 : i32
    %83 = vector.broadcast %c240_i32 : i32 to vector<1x1024xi32>
    %84 = arith.cmpi slt, %3, %83 : vector<1x1024xi32>
    %c1_i32_28 = arith.constant 1 : i32
    %85 = vector.broadcast %c1_i32_28 : i32 to vector<1x1024xi32>
    %86 = arith.cmpi sge, %5, %85 : vector<1x1024xi32>
    %87 = arith.andi %84, %86 : vector<1x1024xi1>
    %cst_29 = arith.constant 0.000000e+00 : f32
    %88 = vector.shape_cast %87 : vector<1x1024xi1> to vector<1x1024xi1>
    %89 = vector.broadcast %88 : vector<1x1024xi1> to vector<4x1024xi1>
    %90 = vector.broadcast %cst_29 : f32 to vector<4x1024xf32>
    %91 = arith.select %89, %82, %90 : vector<4x1024xi1>, vector<4x1024xf32>
    %c6 = arith.constant 6 : index
    %c0_30 = arith.constant 0 : index
    %c0_31 = arith.constant 0 : index
    %92 = vector.load %arg1[%c6, %c0_30, %c0_31] : memref<9x8x4xf32, #tpu.memory_space<vmem>>, vector<1x8x4xf32>
    %93 = vector.shape_cast %92 : vector<1x8x4xf32> to vector<8x4xf32>
    %cst_32 = arith.constant dense<0.000000e+00> : vector<8x1024xf32>
    %94 = tpu.matmul %93, %91, %cst_32 {dimension_numbers = #tpu.dot_dimension_numbers<[1], [0], [0], [1], [0, 0, 1, 1], [], []>} : vector<8x4xf32>, vector<4x1024xf32>, vector<8x1024xf32> -> vector<8x1024xf32>
    %95 = arith.addf %79, %94 : vector<8x1024xf32>
    %96 = vector.extract_strided_slice %0 {offsets = [0, 16], sizes = [4, 1008], strides = [1, 1]} : vector<4x1024xf32> to vector<4x1008xf32>
    %97 = vector.extract_strided_slice %0 {offsets = [0, 0], sizes = [4, 16], strides = [1, 1]} : vector<4x1024xf32> to vector<4x16xf32>
    %98 = tpu.concatenate %96, %97 in 1 : vector<4x1008xf32>, vector<4x16xf32> -> vector<4x1024xf32>
    %c240_i32_33 = arith.constant 240 : i32
    %99 = vector.broadcast %c240_i32_33 : i32 to vector<1x1024xi32>
    %100 = arith.cmpi slt, %3, %99 : vector<1x1024xi32>
    %cst_34 = arith.constant 0.000000e+00 : f32
    %101 = vector.shape_cast %100 : vector<1x1024xi1> to vector<1x1024xi1>
    %102 = vector.broadcast %101 : vector<1x1024xi1> to vector<4x1024xi1>
    %103 = vector.broadcast %cst_34 : f32 to vector<4x1024xf32>
    %104 = arith.select %102, %98, %103 : vector<4x1024xi1>, vector<4x1024xf32>
    %c7 = arith.constant 7 : index
    %c0_35 = arith.constant 0 : index
    %c0_36 = arith.constant 0 : index
    %105 = vector.load %arg1[%c7, %c0_35, %c0_36] : memref<9x8x4xf32, #tpu.memory_space<vmem>>, vector<1x8x4xf32>
    %106 = vector.shape_cast %105 : vector<1x8x4xf32> to vector<8x4xf32>
    %cst_37 = arith.constant dense<0.000000e+00> : vector<8x1024xf32>
    %107 = tpu.matmul %106, %104, %cst_37 {dimension_numbers = #tpu.dot_dimension_numbers<[1], [0], [0], [1], [0, 0, 1, 1], [], []>} : vector<8x4xf32>, vector<4x1024xf32>, vector<8x1024xf32> -> vector<8x1024xf32>
    %108 = arith.addf %95, %107 : vector<8x1024xf32>
    %109 = vector.extract_strided_slice %0 {offsets = [0, 17], sizes = [4, 1007], strides = [1, 1]} : vector<4x1024xf32> to vector<4x1007xf32>
    %110 = vector.extract_strided_slice %0 {offsets = [0, 0], sizes = [4, 17], strides = [1, 1]} : vector<4x1024xf32> to vector<4x17xf32>
    %111 = tpu.concatenate %109, %110 in 1 : vector<4x1007xf32>, vector<4x17xf32> -> vector<4x1024xf32>
    %c240_i32_38 = arith.constant 240 : i32
    %112 = vector.broadcast %c240_i32_38 : i32 to vector<1x1024xi32>
    %113 = arith.cmpi slt, %3, %112 : vector<1x1024xi32>
    %c14_i32_39 = arith.constant 14 : i32
    %114 = vector.broadcast %c14_i32_39 : i32 to vector<1x1024xi32>
    %115 = arith.cmpi sle, %5, %114 : vector<1x1024xi32>
    %116 = arith.andi %113, %115 : vector<1x1024xi1>
    %cst_40 = arith.constant 0.000000e+00 : f32
    %117 = vector.shape_cast %116 : vector<1x1024xi1> to vector<1x1024xi1>
    %118 = vector.broadcast %117 : vector<1x1024xi1> to vector<4x1024xi1>
    %119 = vector.broadcast %cst_40 : f32 to vector<4x1024xf32>
    %120 = arith.select %118, %111, %119 : vector<4x1024xi1>, vector<4x1024xf32>
    %c8 = arith.constant 8 : index
    %c0_41 = arith.constant 0 : index
    %c0_42 = arith.constant 0 : index
    %121 = vector.load %arg1[%c8, %c0_41, %c0_42] : memref<9x8x4xf32, #tpu.memory_space<vmem>>, vector<1x8x4xf32>
    %122 = vector.shape_cast %121 : vector<1x8x4xf32> to vector<8x4xf32>
    %cst_43 = arith.constant dense<0.000000e+00> : vector<8x1024xf32>
    %123 = tpu.matmul %122, %120, %cst_43 {dimension_numbers = #tpu.dot_dimension_numbers<[1], [0], [0], [1], [0, 0, 1, 1], [], []>} : vector<8x4xf32>, vector<4x1024xf32>, vector<8x1024xf32> -> vector<8x1024xf32>
    %124 = arith.addf %108, %123 : vector<8x1024xf32>
    %cst_44 = arith.constant dense<0.000000e+00> : vector<8xf32>
    %125 = vector.multi_reduction <add>, %124, %cst_44 [1] : vector<8x1024xf32> to vector<8xf32>
    %126 = vector.shape_cast %125 : vector<8xf32> to vector<8x1xf32>
    %c0_45 = arith.constant 0 : index
    %c0_46 = arith.constant 0 : index
    %c0_47 = arith.constant 0 : index
    %127 = vector.load %arg3[%c0_45, %c0_46, %c0_47] : memref<1x8x2xf32, #tpu.memory_space<vmem>>, vector<1x8x1xf32>
    %128 = vector.shape_cast %127 : vector<1x8x1xf32> to vector<8x1xf32>
    %129 = vector.shape_cast %126 : vector<8x1xf32> to vector<1x8x1xf32>
    tpu.vector_store %arg3[%c0_45, %c0_46, %c0_47], %129 {strides = array<i32>} : memref<1x8x2xf32, #tpu.memory_space<vmem>>, vector<1x8x1xf32>,
    %130 = arith.mulf %124, %124 : vector<8x1024xf32>
    %cst_48 = arith.constant dense<0.000000e+00> : vector<8xf32>
    %131 = vector.multi_reduction <add>, %130, %cst_48 [1] : vector<8x1024xf32> to vector<8xf32>
    %132 = vector.shape_cast %131 : vector<8xf32> to vector<8x1xf32>
    %c0_49 = arith.constant 0 : index
    %c0_50 = arith.constant 0 : index
    %c1_51 = arith.constant 1 : index
    %133 = vector.load %arg3[%c0_49, %c0_50, %c1_51] : memref<1x8x2xf32, #tpu.memory_space<vmem>>, vector<1x8x1xf32>
    %134 = vector.shape_cast %133 : vector<1x8x1xf32> to vector<8x1xf32>
    %135 = vector.shape_cast %132 : vector<8x1xf32> to vector<1x8x1xf32>
    tpu.vector_store %arg3[%c0_49, %c0_50, %c1_51], %135 {strides = array<i32>} : memref<1x8x2xf32, #tpu.memory_space<vmem>>, vector<1x8x1xf32>,
    return
  }
  func.func @transform_0(%arg0: i32) -> (i32, i32, i32) {
    %c0_i32 = arith.constant 0 : i32
    %c0_i32_0 = arith.constant 0 : i32
    %c0_i32_1 = arith.constant 0 : i32
    %c0_i32_2 = arith.constant 0 : i32
    return %c0_i32, %c0_i32_0, %c0_i32_1 : i32, i32, i32
  }
  func.func @transform_1(%arg0: i32) -> (i32, i32) {
    %c0_i32 = arith.constant 0 : i32
    %c0_i32_0 = arith.constant 0 : i32
    return %c0_i32, %arg0 : i32, i32
  }
  func.func @transform_2(%arg0: i32) -> (i32, i32, i32) {
    %c0_i32 = arith.constant 0 : i32
    %c0_i32_0 = arith.constant 0 : i32
    %c0_i32_1 = arith.constant 0 : i32
    return %arg0, %c0_i32, %c0_i32_0 : i32, i32, i32
  }
}

module attributes {stable_mosaic.version = 11 : i64} {
  func.func @conv_bn_kernel(%arg0: i32, %arg1: memref<8x2xf32, #tpu.memory_space<vmem>>, %arg2: memref<9x8x4xf32, #tpu.memory_space<vmem>>, %arg3: memref<4x1024xf32, #tpu.memory_space<vmem>>, %arg4: memref<4x8x256xf32, #tpu.memory_space<vmem>>) attributes {dimension_semantics = [#tpu.dimension_semantics<parallel>], iteration_bounds = array<i64: 1>, scalar_prefetch = 0 : i64, scratch_operands = 0 : i64, tpu.core_type = #tpu.core_type<tc>, window_params = [{pipeline_mode = #tpu.pipeline_mode<synchronous>, transform_indices = @transform_0, window_bounds = array<i64: 8, 2>}, {pipeline_mode = #tpu.pipeline_mode<synchronous>, transform_indices = @transform_1, window_bounds = array<i64: 9, 8, 4>}, {transform_indices = @transform_2, window_bounds = array<i64: 4, 1024>}, {transform_indices = @transform_3, window_bounds = array<i64: 4, 8, 256>}]} {
    %c0 = arith.constant 0 : index
    %c0_0 = arith.constant 0 : index
    %0 = vector.load %arg3[%c0, %c0_0] : memref<4x1024xf32, #tpu.memory_space<vmem>>, vector<4x1024xf32>
    %1 = tpu.iota {dimensions = array<i32: 1>} : vector<1x1024xi32>
    %c255_i32 = arith.constant 255 : i32
    %2 = vector.broadcast %c255_i32 : i32 to vector<1x1024xi32>
    %3 = arith.andi %1, %2 : vector<1x1024xi32>
    %c15_i32 = arith.constant 15 : i32
    %4 = vector.broadcast %c15_i32 : i32 to vector<1x1024xi32>
    %5 = arith.andi %1, %4 : vector<1x1024xi32>
    %6 = vector.extract_strided_slice %0 {offsets = [0, 1007], sizes = [4, 17], strides = [1, 1]} : vector<4x1024xf32> to vector<4x17xf32>
    %7 = vector.extract_strided_slice %0 {offsets = [0, 0], sizes = [4, 1007], strides = [1, 1]} : vector<4x1024xf32> to vector<4x1007xf32>
    %8 = tpu.concatenate %6, %7 in 1 : vector<4x17xf32>, vector<4x1007xf32> -> vector<4x1024xf32>
    %c16_i32 = arith.constant 16 : i32
    %9 = vector.broadcast %c16_i32 : i32 to vector<1x1024xi32>
    %10 = arith.cmpi sge, %3, %9 : vector<1x1024xi32>
    %c1_i32 = arith.constant 1 : i32
    %11 = vector.broadcast %c1_i32 : i32 to vector<1x1024xi32>
    %12 = arith.cmpi sge, %5, %11 : vector<1x1024xi32>
    %13 = arith.andi %10, %12 : vector<1x1024xi1>
    %cst = arith.constant 0.000000e+00 : f32
    %14 = vector.shape_cast %13 : vector<1x1024xi1> to vector<1x1024xi1>
    %15 = vector.broadcast %14 : vector<1x1024xi1> to vector<4x1024xi1>
    %16 = vector.broadcast %cst : f32 to vector<4x1024xf32>
    %17 = arith.select %15, %8, %16 : vector<4x1024xi1>, vector<4x1024xf32>
    %c0_1 = arith.constant 0 : index
    %c0_2 = arith.constant 0 : index
    %c0_3 = arith.constant 0 : index
    %18 = vector.load %arg2[%c0_1, %c0_2, %c0_3] : memref<9x8x4xf32, #tpu.memory_space<vmem>>, vector<1x8x4xf32>
    %19 = vector.shape_cast %18 : vector<1x8x4xf32> to vector<8x4xf32>
    %cst_4 = arith.constant dense<0.000000e+00> : vector<8x1024xf32>
    %20 = tpu.matmul %19, %17, %cst_4 {dimension_numbers = #tpu.dot_dimension_numbers<[1], [0], [0], [1], [0, 0, 1, 1], [], []>} : vector<8x4xf32>, vector<4x1024xf32>, vector<8x1024xf32> -> vector<8x1024xf32>
    %21 = vector.extract_strided_slice %0 {offsets = [0, 1008], sizes = [4, 16], strides = [1, 1]} : vector<4x1024xf32> to vector<4x16xf32>
    %22 = vector.extract_strided_slice %0 {offsets = [0, 0], sizes = [4, 1008], strides = [1, 1]} : vector<4x1024xf32> to vector<4x1008xf32>
    %23 = tpu.concatenate %21, %22 in 1 : vector<4x16xf32>, vector<4x1008xf32> -> vector<4x1024xf32>
    %c16_i32_5 = arith.constant 16 : i32
    %24 = vector.broadcast %c16_i32_5 : i32 to vector<1x1024xi32>
    %25 = arith.cmpi sge, %3, %24 : vector<1x1024xi32>
    %cst_6 = arith.constant 0.000000e+00 : f32
    %26 = vector.shape_cast %25 : vector<1x1024xi1> to vector<1x1024xi1>
    %27 = vector.broadcast %26 : vector<1x1024xi1> to vector<4x1024xi1>
    %28 = vector.broadcast %cst_6 : f32 to vector<4x1024xf32>
    %29 = arith.select %27, %23, %28 : vector<4x1024xi1>, vector<4x1024xf32>
    %c1 = arith.constant 1 : index
    %c0_7 = arith.constant 0 : index
    %c0_8 = arith.constant 0 : index
    %30 = vector.load %arg2[%c1, %c0_7, %c0_8] : memref<9x8x4xf32, #tpu.memory_space<vmem>>, vector<1x8x4xf32>
    %31 = vector.shape_cast %30 : vector<1x8x4xf32> to vector<8x4xf32>
    %cst_9 = arith.constant dense<0.000000e+00> : vector<8x1024xf32>
    %32 = tpu.matmul %31, %29, %cst_9 {dimension_numbers = #tpu.dot_dimension_numbers<[1], [0], [0], [1], [0, 0, 1, 1], [], []>} : vector<8x4xf32>, vector<4x1024xf32>, vector<8x1024xf32> -> vector<8x1024xf32>
    %33 = arith.addf %20, %32 : vector<8x1024xf32>
    %34 = vector.extract_strided_slice %0 {offsets = [0, 1009], sizes = [4, 15], strides = [1, 1]} : vector<4x1024xf32> to vector<4x15xf32>
    %35 = vector.extract_strided_slice %0 {offsets = [0, 0], sizes = [4, 1009], strides = [1, 1]} : vector<4x1024xf32> to vector<4x1009xf32>
    %36 = tpu.concatenate %34, %35 in 1 : vector<4x15xf32>, vector<4x1009xf32> -> vector<4x1024xf32>
    %c16_i32_10 = arith.constant 16 : i32
    %37 = vector.broadcast %c16_i32_10 : i32 to vector<1x1024xi32>
    %38 = arith.cmpi sge, %3, %37 : vector<1x1024xi32>
    %c14_i32 = arith.constant 14 : i32
    %39 = vector.broadcast %c14_i32 : i32 to vector<1x1024xi32>
    %40 = arith.cmpi sle, %5, %39 : vector<1x1024xi32>
    %41 = arith.andi %38, %40 : vector<1x1024xi1>
    %cst_11 = arith.constant 0.000000e+00 : f32
    %42 = vector.shape_cast %41 : vector<1x1024xi1> to vector<1x1024xi1>
    %43 = vector.broadcast %42 : vector<1x1024xi1> to vector<4x1024xi1>
    %44 = vector.broadcast %cst_11 : f32 to vector<4x1024xf32>
    %45 = arith.select %43, %36, %44 : vector<4x1024xi1>, vector<4x1024xf32>
    %c2 = arith.constant 2 : index
    %c0_12 = arith.constant 0 : index
    %c0_13 = arith.constant 0 : index
    %46 = vector.load %arg2[%c2, %c0_12, %c0_13] : memref<9x8x4xf32, #tpu.memory_space<vmem>>, vector<1x8x4xf32>
    %47 = vector.shape_cast %46 : vector<1x8x4xf32> to vector<8x4xf32>
    %cst_14 = arith.constant dense<0.000000e+00> : vector<8x1024xf32>
    %48 = tpu.matmul %47, %45, %cst_14 {dimension_numbers = #tpu.dot_dimension_numbers<[1], [0], [0], [1], [0, 0, 1, 1], [], []>} : vector<8x4xf32>, vector<4x1024xf32>, vector<8x1024xf32> -> vector<8x1024xf32>
    %49 = arith.addf %33, %48 : vector<8x1024xf32>
    %50 = vector.extract_strided_slice %0 {offsets = [0, 1023], sizes = [4, 1], strides = [1, 1]} : vector<4x1024xf32> to vector<4x1xf32>
    %51 = vector.extract_strided_slice %0 {offsets = [0, 0], sizes = [4, 1023], strides = [1, 1]} : vector<4x1024xf32> to vector<4x1023xf32>
    %52 = tpu.concatenate %50, %51 in 1 : vector<4x1xf32>, vector<4x1023xf32> -> vector<4x1024xf32>
    %c1_i32_15 = arith.constant 1 : i32
    %53 = vector.broadcast %c1_i32_15 : i32 to vector<1x1024xi32>
    %54 = arith.cmpi sge, %5, %53 : vector<1x1024xi32>
    %cst_16 = arith.constant 0.000000e+00 : f32
    %55 = vector.shape_cast %54 : vector<1x1024xi1> to vector<1x1024xi1>
    %56 = vector.broadcast %55 : vector<1x1024xi1> to vector<4x1024xi1>
    %57 = vector.broadcast %cst_16 : f32 to vector<4x1024xf32>
    %58 = arith.select %56, %52, %57 : vector<4x1024xi1>, vector<4x1024xf32>
    %c3 = arith.constant 3 : index
    %c0_17 = arith.constant 0 : index
    %c0_18 = arith.constant 0 : index
    %59 = vector.load %arg2[%c3, %c0_17, %c0_18] : memref<9x8x4xf32, #tpu.memory_space<vmem>>, vector<1x8x4xf32>
    %60 = vector.shape_cast %59 : vector<1x8x4xf32> to vector<8x4xf32>
    %cst_19 = arith.constant dense<0.000000e+00> : vector<8x1024xf32>
    %61 = tpu.matmul %60, %58, %cst_19 {dimension_numbers = #tpu.dot_dimension_numbers<[1], [0], [0], [1], [0, 0, 1, 1], [], []>} : vector<8x4xf32>, vector<4x1024xf32>, vector<8x1024xf32> -> vector<8x1024xf32>
    %62 = arith.addf %49, %61 : vector<8x1024xf32>
    %c4 = arith.constant 4 : index
    %c0_20 = arith.constant 0 : index
    %c0_21 = arith.constant 0 : index
    %63 = vector.load %arg2[%c4, %c0_20, %c0_21] : memref<9x8x4xf32, #tpu.memory_space<vmem>>, vector<1x8x4xf32>
    %64 = vector.shape_cast %63 : vector<1x8x4xf32> to vector<8x4xf32>
    %cst_22 = arith.constant dense<0.000000e+00> : vector<8x1024xf32>
    %65 = tpu.matmul %64, %0, %cst_22 {dimension_numbers = #tpu.dot_dimension_numbers<[1], [0], [0], [1], [0, 0, 1, 1], [], []>} : vector<8x4xf32>, vector<4x1024xf32>, vector<8x1024xf32> -> vector<8x1024xf32>
    %66 = arith.addf %62, %65 : vector<8x1024xf32>
    %67 = vector.extract_strided_slice %0 {offsets = [0, 1], sizes = [4, 1023], strides = [1, 1]} : vector<4x1024xf32> to vector<4x1023xf32>
    %68 = vector.extract_strided_slice %0 {offsets = [0, 0], sizes = [4, 1], strides = [1, 1]} : vector<4x1024xf32> to vector<4x1xf32>
    %69 = tpu.concatenate %67, %68 in 1 : vector<4x1023xf32>, vector<4x1xf32> -> vector<4x1024xf32>
    %c14_i32_23 = arith.constant 14 : i32
    %70 = vector.broadcast %c14_i32_23 : i32 to vector<1x1024xi32>
    %71 = arith.cmpi sle, %5, %70 : vector<1x1024xi32>
    %cst_24 = arith.constant 0.000000e+00 : f32
    %72 = vector.shape_cast %71 : vector<1x1024xi1> to vector<1x1024xi1>
    %73 = vector.broadcast %72 : vector<1x1024xi1> to vector<4x1024xi1>
    %74 = vector.broadcast %cst_24 : f32 to vector<4x1024xf32>
    %75 = arith.select %73, %69, %74 : vector<4x1024xi1>, vector<4x1024xf32>
    %c5 = arith.constant 5 : index
    %c0_25 = arith.constant 0 : index
    %c0_26 = arith.constant 0 : index
    %76 = vector.load %arg2[%c5, %c0_25, %c0_26] : memref<9x8x4xf32, #tpu.memory_space<vmem>>, vector<1x8x4xf32>
    %77 = vector.shape_cast %76 : vector<1x8x4xf32> to vector<8x4xf32>
    %cst_27 = arith.constant dense<0.000000e+00> : vector<8x1024xf32>
    %78 = tpu.matmul %77, %75, %cst_27 {dimension_numbers = #tpu.dot_dimension_numbers<[1], [0], [0], [1], [0, 0, 1, 1], [], []>} : vector<8x4xf32>, vector<4x1024xf32>, vector<8x1024xf32> -> vector<8x1024xf32>
    %79 = arith.addf %66, %78 : vector<8x1024xf32>
    %80 = vector.extract_strided_slice %0 {offsets = [0, 15], sizes = [4, 1009], strides = [1, 1]} : vector<4x1024xf32> to vector<4x1009xf32>
    %81 = vector.extract_strided_slice %0 {offsets = [0, 0], sizes = [4, 15], strides = [1, 1]} : vector<4x1024xf32> to vector<4x15xf32>
    %82 = tpu.concatenate %80, %81 in 1 : vector<4x1009xf32>, vector<4x15xf32> -> vector<4x1024xf32>
    %c240_i32 = arith.constant 240 : i32
    %83 = vector.broadcast %c240_i32 : i32 to vector<1x1024xi32>
    %84 = arith.cmpi slt, %3, %83 : vector<1x1024xi32>
    %c1_i32_28 = arith.constant 1 : i32
    %85 = vector.broadcast %c1_i32_28 : i32 to vector<1x1024xi32>
    %86 = arith.cmpi sge, %5, %85 : vector<1x1024xi32>
    %87 = arith.andi %84, %86 : vector<1x1024xi1>
    %cst_29 = arith.constant 0.000000e+00 : f32
    %88 = vector.shape_cast %87 : vector<1x1024xi1> to vector<1x1024xi1>
    %89 = vector.broadcast %88 : vector<1x1024xi1> to vector<4x1024xi1>
    %90 = vector.broadcast %cst_29 : f32 to vector<4x1024xf32>
    %91 = arith.select %89, %82, %90 : vector<4x1024xi1>, vector<4x1024xf32>
    %c6 = arith.constant 6 : index
    %c0_30 = arith.constant 0 : index
    %c0_31 = arith.constant 0 : index
    %92 = vector.load %arg2[%c6, %c0_30, %c0_31] : memref<9x8x4xf32, #tpu.memory_space<vmem>>, vector<1x8x4xf32>
    %93 = vector.shape_cast %92 : vector<1x8x4xf32> to vector<8x4xf32>
    %cst_32 = arith.constant dense<0.000000e+00> : vector<8x1024xf32>
    %94 = tpu.matmul %93, %91, %cst_32 {dimension_numbers = #tpu.dot_dimension_numbers<[1], [0], [0], [1], [0, 0, 1, 1], [], []>} : vector<8x4xf32>, vector<4x1024xf32>, vector<8x1024xf32> -> vector<8x1024xf32>
    %95 = arith.addf %79, %94 : vector<8x1024xf32>
    %96 = vector.extract_strided_slice %0 {offsets = [0, 16], sizes = [4, 1008], strides = [1, 1]} : vector<4x1024xf32> to vector<4x1008xf32>
    %97 = vector.extract_strided_slice %0 {offsets = [0, 0], sizes = [4, 16], strides = [1, 1]} : vector<4x1024xf32> to vector<4x16xf32>
    %98 = tpu.concatenate %96, %97 in 1 : vector<4x1008xf32>, vector<4x16xf32> -> vector<4x1024xf32>
    %c240_i32_33 = arith.constant 240 : i32
    %99 = vector.broadcast %c240_i32_33 : i32 to vector<1x1024xi32>
    %100 = arith.cmpi slt, %3, %99 : vector<1x1024xi32>
    %cst_34 = arith.constant 0.000000e+00 : f32
    %101 = vector.shape_cast %100 : vector<1x1024xi1> to vector<1x1024xi1>
    %102 = vector.broadcast %101 : vector<1x1024xi1> to vector<4x1024xi1>
    %103 = vector.broadcast %cst_34 : f32 to vector<4x1024xf32>
    %104 = arith.select %102, %98, %103 : vector<4x1024xi1>, vector<4x1024xf32>
    %c7 = arith.constant 7 : index
    %c0_35 = arith.constant 0 : index
    %c0_36 = arith.constant 0 : index
    %105 = vector.load %arg2[%c7, %c0_35, %c0_36] : memref<9x8x4xf32, #tpu.memory_space<vmem>>, vector<1x8x4xf32>
    %106 = vector.shape_cast %105 : vector<1x8x4xf32> to vector<8x4xf32>
    %cst_37 = arith.constant dense<0.000000e+00> : vector<8x1024xf32>
    %107 = tpu.matmul %106, %104, %cst_37 {dimension_numbers = #tpu.dot_dimension_numbers<[1], [0], [0], [1], [0, 0, 1, 1], [], []>} : vector<8x4xf32>, vector<4x1024xf32>, vector<8x1024xf32> -> vector<8x1024xf32>
    %108 = arith.addf %95, %107 : vector<8x1024xf32>
    %109 = vector.extract_strided_slice %0 {offsets = [0, 17], sizes = [4, 1007], strides = [1, 1]} : vector<4x1024xf32> to vector<4x1007xf32>
    %110 = vector.extract_strided_slice %0 {offsets = [0, 0], sizes = [4, 17], strides = [1, 1]} : vector<4x1024xf32> to vector<4x17xf32>
    %111 = tpu.concatenate %109, %110 in 1 : vector<4x1007xf32>, vector<4x17xf32> -> vector<4x1024xf32>
    %c240_i32_38 = arith.constant 240 : i32
    %112 = vector.broadcast %c240_i32_38 : i32 to vector<1x1024xi32>
    %113 = arith.cmpi slt, %3, %112 : vector<1x1024xi32>
    %c14_i32_39 = arith.constant 14 : i32
    %114 = vector.broadcast %c14_i32_39 : i32 to vector<1x1024xi32>
    %115 = arith.cmpi sle, %5, %114 : vector<1x1024xi32>
    %116 = arith.andi %113, %115 : vector<1x1024xi1>
    %cst_40 = arith.constant 0.000000e+00 : f32
    %117 = vector.shape_cast %116 : vector<1x1024xi1> to vector<1x1024xi1>
    %118 = vector.broadcast %117 : vector<1x1024xi1> to vector<4x1024xi1>
    %119 = vector.broadcast %cst_40 : f32 to vector<4x1024xf32>
    %120 = arith.select %118, %111, %119 : vector<4x1024xi1>, vector<4x1024xf32>
    %c8 = arith.constant 8 : index
    %c0_41 = arith.constant 0 : index
    %c0_42 = arith.constant 0 : index
    %121 = vector.load %arg2[%c8, %c0_41, %c0_42] : memref<9x8x4xf32, #tpu.memory_space<vmem>>, vector<1x8x4xf32>
    %122 = vector.shape_cast %121 : vector<1x8x4xf32> to vector<8x4xf32>
    %cst_43 = arith.constant dense<0.000000e+00> : vector<8x1024xf32>
    %123 = tpu.matmul %122, %120, %cst_43 {dimension_numbers = #tpu.dot_dimension_numbers<[1], [0], [0], [1], [0, 0, 1, 1], [], []>} : vector<8x4xf32>, vector<4x1024xf32>, vector<8x1024xf32> -> vector<8x1024xf32>
    %124 = arith.addf %108, %123 : vector<8x1024xf32>
    %c0_44 = arith.constant 0 : index
    %c0_45 = arith.constant 0 : index
    %125 = vector.load %arg1[%c0_44, %c0_45] : memref<8x2xf32, #tpu.memory_space<vmem>>, vector<8x1xf32>
    %126 = vector.broadcast %125 : vector<8x1xf32> to vector<8x1024xf32>
    %127 = arith.mulf %124, %126 : vector<8x1024xf32>
    %c0_46 = arith.constant 0 : index
    %c1_47 = arith.constant 1 : index
    %128 = vector.load %arg1[%c0_46, %c1_47] : memref<8x2xf32, #tpu.memory_space<vmem>>, vector<8x1xf32>
    %129 = vector.broadcast %128 : vector<8x1xf32> to vector<8x1024xf32>
    %130 = arith.addf %127, %129 : vector<8x1024xf32>
    %131 = vector.extract_strided_slice %130 {offsets = [0, 0], sizes = [8, 256], strides = [1, 1]} : vector<8x1024xf32> to vector<8x256xf32>
    %c0_48 = arith.constant 0 : index
    %c0_49 = arith.constant 0 : index
    %c0_50 = arith.constant 0 : index
    %132 = vector.load %arg4[%c0_48, %c0_49, %c0_50] : memref<4x8x256xf32, #tpu.memory_space<vmem>>, vector<1x8x256xf32>
    %133 = vector.shape_cast %132 : vector<1x8x256xf32> to vector<8x256xf32>
    %134 = vector.shape_cast %131 : vector<8x256xf32> to vector<1x8x256xf32>
    tpu.vector_store %arg4[%c0_48, %c0_49, %c0_50], %134 {strides = array<i32>} : memref<4x8x256xf32, #tpu.memory_space<vmem>>, vector<1x8x256xf32>,
    %135 = vector.extract_strided_slice %130 {offsets = [0, 256], sizes = [8, 256], strides = [1, 1]} : vector<8x1024xf32> to vector<8x256xf32>
    %c1_51 = arith.constant 1 : index
    %c0_52 = arith.constant 0 : index
    %c0_53 = arith.constant 0 : index
    %136 = vector.load %arg4[%c1_51, %c0_52, %c0_53] : memref<4x8x256xf32, #tpu.memory_space<vmem>>, vector<1x8x256xf32>
    %137 = vector.shape_cast %136 : vector<1x8x256xf32> to vector<8x256xf32>
    %138 = vector.shape_cast %135 : vector<8x256xf32> to vector<1x8x256xf32>
    tpu.vector_store %arg4[%c1_51, %c0_52, %c0_53], %138 {strides = array<i32>} : memref<4x8x256xf32, #tpu.memory_space<vmem>>, vector<1x8x256xf32>,
    %139 = vector.extract_strided_slice %130 {offsets = [0, 512], sizes = [8, 256], strides = [1, 1]} : vector<8x1024xf32> to vector<8x256xf32>
    %c2_54 = arith.constant 2 : index
    %c0_55 = arith.constant 0 : index
    %c0_56 = arith.constant 0 : index
    %140 = vector.load %arg4[%c2_54, %c0_55, %c0_56] : memref<4x8x256xf32, #tpu.memory_space<vmem>>, vector<1x8x256xf32>
    %141 = vector.shape_cast %140 : vector<1x8x256xf32> to vector<8x256xf32>
    %142 = vector.shape_cast %139 : vector<8x256xf32> to vector<1x8x256xf32>
    tpu.vector_store %arg4[%c2_54, %c0_55, %c0_56], %142 {strides = array<i32>} : memref<4x8x256xf32, #tpu.memory_space<vmem>>, vector<1x8x256xf32>,
    %143 = vector.extract_strided_slice %130 {offsets = [0, 768], sizes = [8, 256], strides = [1, 1]} : vector<8x1024xf32> to vector<8x256xf32>
    %c3_57 = arith.constant 3 : index
    %c0_58 = arith.constant 0 : index
    %c0_59 = arith.constant 0 : index
    %144 = vector.load %arg4[%c3_57, %c0_58, %c0_59] : memref<4x8x256xf32, #tpu.memory_space<vmem>>, vector<1x8x256xf32>
    %145 = vector.shape_cast %144 : vector<1x8x256xf32> to vector<8x256xf32>
    %146 = vector.shape_cast %143 : vector<8x256xf32> to vector<1x8x256xf32>
    tpu.vector_store %arg4[%c3_57, %c0_58, %c0_59], %146 {strides = array<i32>} : memref<4x8x256xf32, #tpu.memory_space<vmem>>, vector<1x8x256xf32>,
    return
  }
  func.func @transform_0(%arg0: i32) -> (i32, i32) {
    %c0_i32 = arith.constant 0 : i32
    %c0_i32_0 = arith.constant 0 : i32
    %c0_i32_1 = arith.constant 0 : i32
    return %c0_i32, %c0_i32_0 : i32, i32
  }
  func.func @transform_1(%arg0: i32) -> (i32, i32, i32) {
    %c0_i32 = arith.constant 0 : i32
    %c0_i32_0 = arith.constant 0 : i32
    %c0_i32_1 = arith.constant 0 : i32
    %c0_i32_2 = arith.constant 0 : i32
    return %c0_i32, %c0_i32_0, %c0_i32_1 : i32, i32, i32
  }
  func.func @transform_2(%arg0: i32) -> (i32, i32) {
    %c0_i32 = arith.constant 0 : i32
    %c0_i32_0 = arith.constant 0 : i32
    return %c0_i32, %arg0 : i32, i32
  }
  func.func @transform_3(%arg0: i32) -> (i32, i32, i32) {
    %c0_i32 = arith.constant 0 : i32
    %c0_i32_0 = arith.constant 0 : i32
    %c0_i32_1 = arith.constant 0 : i32
    return %arg0, %c0_i32, %c0_i32_0 : i32, i32, i32
  }
}

</mosaic_0001>

<bundles_post_ra>
// kernel: layer_t_wrapper_forward.2
= control target key start
LH: loop header
LB: loop body
LE: loop exit
PB: predicated region body
PF: predicated region fallthrough
CT: control target
= control target key end

     0   :  { %s3668_s15 = smov 16   ;;  %v3669_v5 = vmov 0.0   ;;  %s3670_s18 = smov 17   ;;  %v15_v9 = vlaneseq  ;;  %vm148_vm0 = vcmask 130048   ;;  %vm4371_vm2 = vcmask 1043456   ;;  %s4361_s1 = inlined_call_operand.vmem [shape: f32[4,1024], index: 1, kind: input, shape index: {}]   ;;  %s4362_s0 = inlined_call_operand.vmem [shape: f32[9,8,4], index: 0, kind: input, shape index: {}]   ;;  %s4363_s2 = inlined_call_operand.vmem [shape: f32[1,8,2], index: 2, kind: output, shape index: {}]  }
   0x1   :  { %v3695_v0 = vld [vmem:[%s4361_s1 + $0x8] sm:$0xff]  ;;  %v3700_v1 = vld [vmem:[%s4361_s1 + $0x18] sm:$0xff]  ;;  %v3705_v2 = vld [vmem:[%s4361_s1] sm:$0xff]  ;;  %284 = vmatprep.mubr.f32.mxu0 %v3669_v5  ;;  %355 = vmatprep.mubr.f32.mxu1 %v3669_v5  ;;  %s3672_s19 = smov 1   ;;  %s3673_s20 = smov 127   ;;  %vm4364_vm3 = vcmask 31744  }
   0x2   :  { %138 = vrot.lane.b32.xlu1 %v3695_v0, %s3668_s15  ;;  %134 = vrot.lane.b32.xlu0 %v3705_v2, %s3668_s15  ;;  %v3711_v3 = vcombine.high %v3700_v1, %v3700_v1  ;;  %v3715_v4 = vcombine.high %v3705_v2, %v3705_v2  ;;  %v3723_v6 = vcombine.high %v3695_v0, %v3695_v0  ;;  %v3728_v7 = vld [vmem:[%s4361_s1 + $0x10] sm:$0xff]  ;;  %s3671_s1 = smov 15   ;;  %s3674_s21 = smov 113   ;;  %v3786_v10 = vand.u32 127, %v15_v9  ;;  %v3475_v23 = vld [vmem:[%s4362_s0 + $0x8] sm:$0xff] }
   0x3   :  { %v3734_v8 = vcombine.high %v3728_v7, %v3728_v7  ;;  %s3675_s22 = smov 112   ;;  %s3676_s23 = smov 111   ;;  %vm65_vm6 = vcmask 138240   ;;  %v4405_v61 = vmov 0  ;;  %v130_v63 = vld [vmem:[%s4362_s0] sm:$0xff]  ;;  %v4425_v15 = vmov 0 }
   0x4   :  { %v24_v11 = vand.u32 255, %v3786_v10  ;;  %v3794_v12 = vadd.s32 256, %v3786_v10  ;;  %v3805_v16 = vadd.s32 512, %v3786_v10  ;;  %v3820_v24 = vadd.s32 128, %v3786_v10 }
   0x5   :  { %v3830_v28 = vadd.s32 768, %v3786_v10  ;;  %v32_v39 = vand.u32 15, %v3786_v10  ;;  %v3870_v44 = vadd.s32 384, %v3786_v10  ;;  %v3897_v55 = vadd.s32 640, %v3786_v10 }
   0x6   :  { %131 = vrot.lane.b32.xlu0 %v3711_v3, %s3668_s15  ;;  %136 = vrot.lane.b32.xlu1 %v3715_v4, %s3668_s15  ;;  %vm3800_vm1 = vcmp.ge.s32.totalorder %v24_v11, 16  ;;  %v26_v17 = vand.u32 255, %v3794_v12  ;;  %v28_v26 = vand.u32 255, %v3805_v16  ;;  %v33_v35 = vand.u32 15, %v3820_v24 }
   0x7   :  { %v30_v36 = vand.u32 255, %v3830_v28  ;;  %vm3874_vm9 = vcmp.ge.s32.totalorder %v32_v39, 1  ;;  %v34_v51 = vand.u32 15, %v3794_v12  ;;  %v35_v54 = vand.u32 15, %v3870_v44 }
   0x8   :  { %vm3825_vm4 = vcmp.ge.s32.totalorder %v26_v17, 16  ;;  %vm3840_vm5 = vcmp.ge.s32.totalorder %v28_v26, 16  ;;  %vm3861_vm7 = vcmp.ge.s32.totalorder %v33_v35, 1  ;;  %vm98_vm10 = vmand %vm3800_vm1, %vm3874_vm9  ;;  %v3900_v56 = vadd.s32 896, %v3786_v10 }
   0x9   :  { %vm3865_vm8 = vcmp.ge.s32.totalorder %v30_v36, 16  ;;  %v38_v59 = vand.u32 15, %v3830_v28  ;;  %vm3907_vm11 = vcmp.ge.s32.totalorder %v34_v51, 1  ;;  %v36_v62 = vand.u32 15, %v3805_v16 }
   0xa   :  { %140 = vrot.lane.b32.xlu0 %v3723_v6, %s3668_s15  ;;  %142 = vrot.lane.b32.xlu1 %v3728_v7, %s3668_s15  ;;  %v4406_v61 = vsel %vm3907_vm11, 4294967295, %v4405_v61  ;;  %vm3919_vm12 = vcmp.ge.s32.totalorder %v35_v54, 1  ;;  %v4407_v11 = vmov 0  ;;  %vm100_vm13 = vmand %vm3825_vm4, %vm3907_vm11  ;;  %v4413_v26 = vmov 0 }
   0xb   :  { %v4408_v11 = vsel %vm3919_vm12, 4294967295, %v4407_v11  ;;  %vm3932_vm14 = vcmp.ge.s32.totalorder %v38_v59, 1  ;;  %vm3940_vm15 = vcmp.ge.s32.totalorder %v36_v62, 1  ;;  %vm4417_vm11 = vcmask 31744  }
   0xc   :  { %v4435_v16 = vmov 0  ;;  %v29_v42 = vand.u32 255, %v3897_v55 }
   0xe   :  { %144 = vrot.lane.b32.xlu0 %v3734_v8, %s3668_s15  ;;  %51 = vrot.lane.b32.xlu1 %v3705_v2, %s3670_s18 }
  0x12   :  { %53 = vrot.lane.b32.xlu0 %v3715_v4, %s3670_s18  ;;  %146 = vrot.lane.b32.xlu1 %v3700_v1, %s3668_s15 }
  0x16   :  { %42 = vrot.lane.b32.xlu0 %v3711_v3, %s3670_s18  ;;  %55 = vrot.lane.b32.xlu1 %v3695_v0, %s3670_s18 }
  0x1a   :  { %57 = vrot.lane.b32.xlu0 %v3723_v6, %s3670_s18  ;;  %59 = vrot.lane.b32.xlu1 %v3728_v7, %s3670_s18 }
  0x1e   :  { %61 = vrot.lane.b32.xlu0 %v3734_v8, %s3670_s18  ;;  %63 = vrot.lane.b32.xlu1 %v3700_v1, %s3670_s18 }
  0x22   :  { %818 = vrot.lane.b32.xlu0 %v3705_v2, %s3671_s1  ;;  %820 = vrot.lane.b32.xlu1 %v3715_v4, %s3671_s1 }
  0x26   :  { %815 = vrot.lane.b32.xlu0 %v3711_v3, %s3671_s1  ;;  %822 = vrot.lane.b32.xlu1 %v3695_v0, %s3671_s1 }
  0x2a   :  { %824 = vrot.lane.b32.xlu0 %v3723_v6, %s3671_s1  ;;  %826 = vrot.lane.b32.xlu1 %v3728_v7, %s3671_s1 }
  0x2e   :  { %828 = vrot.lane.b32.xlu0 %v3734_v8, %s3671_s1  ;;  %830 = vrot.lane.b32.xlu1 %v3700_v1, %s3671_s1 }
  0x32   :  { %1213 = vrot.lane.b32.xlu0 %v3705_v2, %s3672_s19  ;;  %1215 = vrot.lane.b32.xlu1 %v3715_v4, %s3672_s19 }
  0x36   :  { %1210 = vrot.lane.b32.xlu0 %v3711_v3, %s3672_s19  ;;  %1217 = vrot.lane.b32.xlu1 %v3695_v0, %s3672_s19 }
  0x3a   :  { %1219 = vrot.lane.b32.xlu0 %v3723_v6, %s3672_s19  ;;  %1221 = vrot.lane.b32.xlu1 %v3728_v7, %s3672_s19 }
  0x3e   :  { %1223 = vrot.lane.b32.xlu0 %v3734_v8, %s3672_s19  ;;  %1225 = vrot.lane.b32.xlu1 %v3700_v1, %s3672_s19 }
  0x42   :  { %1904 = vrot.lane.b32.xlu0 %v3715_v4, %s3673_s20  ;;  %1906 = vrot.lane.b32.xlu1 %v3695_v0, %s3673_s20 }
  0x46   :  { %1902 = vrot.lane.b32.xlu0 %v3705_v2, %s3673_s20  ;;  %1908 = vrot.lane.b32.xlu1 %v3723_v6, %s3673_s20 }
  0x4a   :  { %1910 = vrot.lane.b32.xlu0 %v3728_v7, %s3673_s20  ;;  %1912 = vrot.lane.b32.xlu1 %v3734_v8, %s3673_s20 }
  0x4e   :  { %1914 = vrot.lane.b32.xlu0 %v3700_v1, %s3673_s20  ;;  %1916 = vrot.lane.b32.xlu1 %v3711_v3, %s3673_s20 }
  0x52   :  { %2283 = vrot.lane.b32.xlu0 %v3715_v4, %s3674_s21  ;;  %2285 = vrot.lane.b32.xlu1 %v3695_v0, %s3674_s21 }
  0x56   :  { %2281 = vrot.lane.b32.xlu0 %v3705_v2, %s3674_s21  ;;  %2287 = vrot.lane.b32.xlu1 %v3723_v6, %s3674_s21 }
  0x5a   :  { %2289 = vrot.lane.b32.xlu0 %v3728_v7, %s3674_s21  ;;  %2291 = vrot.lane.b32.xlu1 %v3734_v8, %s3674_s21 }
  0x5e   :  { %2293 = vrot.lane.b32.xlu0 %v3700_v1, %s3674_s21  ;;  %2295 = vrot.lane.b32.xlu1 %v3711_v3, %s3674_s21 }
  0x62   :  { %2678 = vrot.lane.b32.xlu0 %v3715_v4, %s3675_s22  ;;  %2680 = vrot.lane.b32.xlu1 %v3695_v0, %s3675_s22 }
  0x66   :  { %2676 = vrot.lane.b32.xlu0 %v3705_v2, %s3675_s22  ;;  %2682 = vrot.lane.b32.xlu1 %v3723_v6, %s3675_s22 }
  0x6a   :  { %2684 = vrot.lane.b32.xlu0 %v3728_v7, %s3675_s22  ;;  %2686 = vrot.lane.b32.xlu1 %v3734_v8, %s3675_s22 }
  0x6e   :  { %2688 = vrot.lane.b32.xlu0 %v3700_v1, %s3675_s22  ;;  %2690 = vrot.lane.b32.xlu1 %v3711_v3, %s3675_s22 }
  0x72   :  { %3057 = vrot.lane.b32.xlu0 %v3715_v4, %s3676_s23  ;;  %3059 = vrot.lane.b32.xlu1 %v3695_v0, %s3676_s23 }
  0x74   :  { %v139_v13 = vpop.permute.xlu1 %138  ;;  %v135_v14 = vpop.permute.xlu0 %134 }
  0x76   :  { %3055 = vrot.lane.b32.xlu0 %v3705_v2, %s3676_s23  ;;  %3061 = vrot.lane.b32.xlu1 %v3723_v6, %s3676_s23 }
  0x78   :  { %v132_v18 = vpop.permute.xlu0 %131  ;;  %v137_v19 = vpop.permute.xlu1 %136 }
  0x79   :  { %v164_v20 = vsel %vm148_vm0, %v132_v18, %v135_v14  ;;  %v149_v21 = vsel %vm148_vm0, %v135_v14, %v137_v19  ;;  %v150_v25 = vsel %vm148_vm0, %v137_v19, %v139_v13  ;;  %v39_v14 = vand.u32 15, %v3900_v56 }
  0x7a   :  { %3063 = vrot.lane.b32.xlu0 %v3728_v7, %s3676_s23  ;;  %3065 = vrot.lane.b32.xlu1 %v3734_v8, %s3676_s23  ;;  %v181_v22 = vsel %vm3800_vm1, %v164_v20, 0.0  ;;  %v183_v32 = vsel %vm3825_vm4, %v150_v25, 0.0  ;;  %v4409_v20 = vmov 0 }
  0x7b   :  { %3476 = vmatprep.subr.msk.mxu0 %vm4371_vm2, %v149_v21  ;;  %v4410_v20 = vsel %vm3932_vm14, 4294967295, %v4409_v20 }
  0x7c   :  { %3477 = vmatpush1.msk.msra.mxu0 %vm4371_vm2, %v181_v22  ;;  %v141_v29 = vpop.permute.xlu0 %140  ;;  %v143_v30 = vpop.permute.xlu1 %142  ;;  %v4411_v22 = vmov 0 }
  0x7d   :  { %v151_v31 = vsel %vm148_vm0, %v139_v13, %v141_v29  ;;  %3478 = vmatmul.mubr.msk.f32.vlgmr.msra.gmra.mrb[0].mxu0 %vm4364_vm3, %v3475_v23  ;;  %v152_v34 = vsel %vm148_vm0, %v141_v29, %v143_v30  ;;  %v37_v13 = vand.u32 15, %v3897_v55  ;;  %v4412_v22 = vsel %vm3940_vm15, 4294967295, %v4411_v22 }
  0x7e   :  { %3479 = vmatprep.subr.msk.mxu1 %vm4371_vm2, %v151_v31  ;;  %3067 = vrot.lane.b32.xlu0 %v3700_v1, %s3676_s23  ;;  %v185_v41 = vsel %vm3840_vm5, %v152_v34, 0.0  ;;  %v4415_v29 = vmov 0 }
  0x7f   :  { %3069 = vrot.lane.b32.xlu1 %v3711_v3, %s3676_s23  ;;  %3480 = vmatpush1.msk.msra.mxu1 %vm4371_vm2, %v183_v32 }
  0x80   :  { %v145_v37 = vpop.permute.xlu0 %144  ;;  %v52_v38 = vpop.permute.xlu1 %51  ;;  %3481 = vmatmul.mubr.msk.f32.vlgmr.msra.gmra.mrb[0].mxu1 %vm4364_vm3, %v3475_v23  ;;  %426 = vmatprep.mubr.f32.mxu0 %v3669_v5 }
  0x81   :  { %v153_v40 = vsel %vm148_vm0, %v143_v30, %v145_v37  ;;  %497 = vmatprep.mubr.f32.mxu1 %v3669_v5 }
  0x82   :  { %3482 = vmatprep.subr.msk.mxu0 %vm4371_vm2, %v153_v40 }
  0x83   :  { %3483 = vmatpush1.msk.msra.mxu0 %vm4371_vm2, %v185_v41 }
  0x84   :  { %v54_v45 = vpop.permute.xlu0 %53  ;;  %v147_v46 = vpop.permute.xlu1 %146  ;;  %3484 = vmatmul.mubr.msk.f32.vlgmr.msra.gmra.mrb[2].mxu0 %vm4364_vm3, %v3475_v23 }
  0x85   :  { %v66_v48 = vsel %vm65_vm6, %v52_v38, %v54_v45  ;;  %v154_v49 = vsel %vm148_vm0, %v145_v37, %v147_v46  ;;  %v155_v50 = vsel %vm148_vm0, %v147_v46, %v132_v18  ;;  %595 = vmatprep.mubr.f32.mxu0 %v3669_v5  ;;  %vm3950_vm0 = vcmp.ge.s32.totalorder %v37_v13, 1 }
  0x86   :  { %v123_v52 = vsel %vm3861_vm7, %v66_v48, 0.0  ;;  %v187_v53 = vsel %vm3865_vm8, %v154_v49, 0.0  ;;  %3485 = vmatprep.subr.msk.mxu1 %vm4371_vm2, %v155_v50  ;;  %v4414_v26 = vsel %vm3950_vm0, 4294967295, %v4413_v26  ;;  %v4418_v46 = vmov 0 }
  0x87   :  { %3486 = vmatpush1.msk.msra.mxu1 %vm4371_vm2, %v187_v53  ;;  %3488 = vmatprep.subr.msk.mxu0 %vm4371_vm2, %v123_v52  ;;  %v4420_v50 = vmov 0 }
  0x88   :  { %v43_v57 = vpop.permute.xlu0 %42  ;;  %v56_v58 = vpop.permute.xlu1 %55  ;;  %3487 = vmatmul.mubr.msk.f32.vlgmr.msra.gmra.mrb[2].mxu1 %vm4364_vm3, %v3475_v23 }
  0x89   :  { %v81_v60 = vsel %vm65_vm6, %v43_v57, %v52_v38  ;;  %666 = vmatprep.mubr.f32.mxu1 %v3669_v5  ;;  %v67_v17 = vsel %vm65_vm6, %v54_v45, %v56_v58 }
  0x8a   :  { %v122_v9 = vsel %vm98_vm10, %v81_v60, 0.0  ;;  %v124_v25 = vsel %vm100_vm13, %v67_v17, 0.0  ;;  %vm3956_vm10 = vcmp.ge.s32.totalorder %v39_v14, 1  ;;  %vm102_vm13 = vmand %vm3840_vm5, %vm3940_vm15  ;;  %vm4376_vm15 = vcmask 121856  }
  0x8b   :  { %3489 = vmatpush1.msk.msra.mxu0 %vm4371_vm2, %v122_v9  ;;  %v4416_v29 = vsel %vm3956_vm10, 4294967295, %v4415_v29  ;;  %v4427_v9 = vmov 0  ;;  %v4430_v17 = vmov 0 }
  0x8c   :  { %v58_v18 = vpop.permute.xlu0 %57  ;;  %v60_v19 = vpop.permute.xlu1 %59  ;;  %3490 = vmatmul.mubr.msk.f32.vlgmr.msra.gmra.mrb[0].mxu0 %vm4364_vm3, %v130_v63  ;;  %vm104_vm3 = vmand %vm3865_vm8, %vm3932_vm14 }
  0x8d   :  { %v68_v21 = vsel %vm65_vm6, %v56_v58, %v58_v18  ;;  %737 = vmatprep.mubr.f32.mxu0 %v3669_v5  ;;  %v69_v30 = vsel %vm65_vm6, %v58_v18, %v60_v19  ;;  %v3500_v58 = vld [vmem:[%s4362_s0 + $0x10] sm:$0xff] }
  0x8e   :  { %v125_v23 = vsel %vm3919_vm12, %v68_v21, 0.0  ;;  %v126_v45 = vsel %vm102_vm13, %v69_v30, 0.0  ;;  %vm4422_vm13 = vmmov %vm4417_vm11  ;;  %vm4442_vm12 = vcmask 31744  }
  0x8f   :  { %3491 = vmatprep.subr.msk.mxu1 %vm4371_vm2, %v125_v23 }
  0x90   :  { %v62_v31 = vpop.permute.xlu0 %61  ;;  %v64_v32 = vpop.permute.xlu1 %63  ;;  %3492 = vmatpush1.msk.msra.mxu1 %vm4371_vm2, %v124_v25 }
  0x91   :  { %v70_v34 = vsel %vm65_vm6, %v60_v19, %v62_v31  ;;  %v71_v36 = vsel %vm65_vm6, %v62_v31, %v64_v32  ;;  %v72_v37 = vsel %vm65_vm6, %v64_v32, %v43_v57  ;;  %3493 = vmatmul.mubr.msk.f32.vlgmr.msra.gmra.mrb[0].mxu1 %vm4417_vm11, %v130_v63  ;;  %vm3983_vm6 = vcmp.le.s32.totalorder %v33_v35, 14 }
  0x92   :  { %v127_v38 = vsel %vm3950_vm0, %v70_v34, 0.0  ;;  %v128_v40 = vsel %vm104_vm3, %v71_v36, 0.0  ;;  %v129_v41 = vsel %vm3956_vm10, %v72_v37, 0.0  ;;  %808 = vmatprep.mubr.f32.mxu1 %v3669_v5  ;;  %v4419_v46 = vsel %vm3983_vm6, 4294967295, %v4418_v46 }
  0x93   :  { %3494 = vmatprep.subr.msk.mxu0 %vm4371_vm2, %v127_v38  ;;  %3497 = vmatprep.subr.msk.mxu1 %vm4371_vm2, %v129_v41  ;;  %vm3991_vm3 = vcmp.le.s32.totalorder %v32_v39, 14  ;;  %v4423_v57 = vmov 0 }
  0x94   :  { %v819_v48 = vpop.permute.xlu0 %818  ;;  %v821_v49 = vpop.permute.xlu1 %820  ;;  %3495 = vmatpush1.msk.msra.mxu0 %vm4371_vm2, %v126_v45  ;;  %3498 = vmatpush1.msk.msra.mxu1 %vm4371_vm2, %v128_v40  ;;  %v4421_v50 = vsel %vm3991_vm3, 4294967295, %v4420_v50  ;;  %vm857_vm10 = vmand %vm3800_vm1, %vm3991_vm3  ;;  %vm4020_vm1 = vcmp.le.s32.totalorder %v35_v54, 14  ;;  %vm4039_vm3 = vcmp.le.s32.totalorder %v36_v62, 14  ;;  %v3513_v40 = vld [vmem:[%s4362_s0 + $0x18] sm:$0xff] }
  0x95   :  { %v833_v52 = vsel %vm4376_vm15, %v819_v48, %v821_v49  ;;  %3496 = vmatmul.mubr.msk.f32.vlgmr.msra.gmra.mrb[2].mxu0 %vm4417_vm11, %v130_v63  ;;  %3499 = vmatmul.mubr.msk.f32.vlgmr.msra.gmra.mrb[2].mxu1 %vm4422_vm13, %v130_v63  ;;  %vm4010_vm11 = vcmp.le.s32.totalorder %v34_v51, 14  ;;  %v4426_v15 = vsel %vm4020_vm1, 4294967295, %v4425_v15  ;;  %v4431_v17 = vsel %vm4039_vm3, 4294967295, %v4430_v17 }
  0x96   :  { %v882_v35 = vsel %vm3983_vm6, %v833_v52, 0.0  ;;  %982 = vmatprep.mubr.f32.mxu0 %v3669_v5  ;;  %1053 = vmatprep.mubr.f32.mxu1 %v3669_v5  ;;  %v4424_v57 = vsel %vm4010_vm11, 4294967295, %v4423_v57  ;;  %vm859_vm13 = vmand %vm3825_vm4, %vm4010_vm11  ;;  %vm4432_vm4 = vcmask 1043456   ;;  %vm4049_vm11 = vcmp.le.s32.totalorder %v37_v13, 14 }
  0x97   :  { %3501 = vmatprep.subr.msk.mxu0 %vm4371_vm2, %v882_v35 }
  0x98   :  { %v816_v10 = vpop.permute.xlu0 %815  ;;  %v823_v39 = vpop.permute.xlu1 %822 }
  0x99   :  { %v848_v53 = vsel %vm4376_vm15, %v816_v10, %v819_v48  ;;  %v834_v12 = vsel %vm4376_vm15, %v821_v49, %v823_v39 }
  0x9a   :  { %v881_v60 = vsel %vm857_vm10, %v848_v53, 0.0  ;;  %vm4031_vm10 = vcmp.le.s32.totalorder %v38_v59, 14  ;;  %v883_v28 = vsel %vm859_vm13, %v834_v12, 0.0  ;;  %v4433_v59 = vmov 0  ;;  %vm861_vm13 = vmand %vm3840_vm5, %vm4039_vm3 }
  0x9b   :  { %3502 = vmatpush1.msk.msra.mxu0 %vm4371_vm2, %v881_v60  ;;  %v4428_v9 = vsel %vm4031_vm10, 4294967295, %v4427_v9  ;;  %vm4429_vm2 = vcmask 31744   ;;  %v4434_v59 = vsel %vm4049_vm11, 4294967295, %v4433_v59  ;;  %vm4387_vm5 = vcmask 7168  }
  0x9c   :  { %v825_v51 = vpop.permute.xlu0 %824  ;;  %v827_v63 = vpop.permute.xlu1 %826  ;;  %3503 = vmatmul.mubr.msk.f32.vlgmr.msra.gmra.mrb[0].mxu0 %vm4429_vm2, %v3500_v58  ;;  %vm4055_vm2 = vcmp.le.s32.totalorder %v39_v14, 14 }
  0x9d   :  { %v835_v54 = vsel %vm4376_vm15, %v823_v39, %v825_v51  ;;  %1124 = vmatprep.mubr.f32.mxu0 %v3669_v5  ;;  %v4436_v16 = vsel %vm4055_vm2, 4294967295, %v4435_v16  ;;  %vm863_vm15 = vmand %vm3865_vm8, %vm4031_vm10 }
  0x9e   :  { %v884_v27 = vsel %vm4020_vm1, %v835_v54, 0.0  ;;  %vm4438_vm1 = vcmask 1043456  }
  0x9f   :  { %3504 = vmatprep.subr.msk.mxu1 %vm4432_vm4, %v884_v27  ;;  %vm4437_vm4 = vcmask 121856   ;;  %vm4443_vm8 = vmmov %vm4438_vm1 }
  0xa0   :  { %v836_v62 = vsel %vm4437_vm4, %v825_v51, %v827_v63  ;;  %v829_v13 = vpop.permute.xlu0 %828  ;;  %v831_v18 = vpop.permute.xlu1 %830  ;;  %3505 = vmatpush1.msk.msra.mxu1 %vm4438_vm1, %v883_v28  ;;  %vm4439_vm6 = vmmov %vm4437_vm4 }
  0xa1   :  { %v837_v14 = vsel %vm4439_vm6, %v827_v63, %v829_v13  ;;  %vm4440_vm14 = vmmov %vm4437_vm4  ;;  %3506 = vmatmul.mubr.msk.f32.vlgmr.msra.gmra.mrb[0].mxu1 %vm4442_vm12, %v3500_v58  ;;  %v885_v25 = vsel %vm861_vm13, %v836_v62, 0.0 }
  0xa2   :  { %v838_v19 = vsel %vm4440_vm14, %v829_v13, %v831_v18  ;;  %vm4441_vm0 = vmmov %vm4437_vm4  ;;  %v886_v43 = vsel %vm4049_vm11, %v837_v14, 0.0  ;;  %1195 = vmatprep.mubr.f32.mxu1 %v3669_v5 }
  0xa3   :  { %v839_v21 = vsel %vm4441_vm0, %v831_v18, %v816_v10  ;;  %v887_v23 = vsel %vm863_vm15, %v838_v19, 0.0  ;;  %3507 = vmatprep.subr.msk.mxu0 %vm4443_vm8, %v886_v43  ;;  %vm4444_vm6 = vmmov %vm4438_vm1  ;;  %vm4447_vm15 = vcmask 31744   ;;  %vm4451_vm8 = vnez %v4408_v11  ;;  %v3526_v18 = vld [vmem:[%s4362_s0 + $0x20] sm:$0xff] }
  0xa4   :  { %v888_v33 = vsel %vm4055_vm2, %v839_v21, 0.0  ;;  %v1214_v30 = vpop.permute.xlu0 %1213  ;;  %v1216_v31 = vpop.permute.xlu1 %1215  ;;  %vm4445_vm14 = vmmov %vm4438_vm1 }
  0xa5   :  { %3510 = vmatprep.subr.msk.mxu1 %vm4444_vm6, %v888_v33  ;;  %3508 = vmatpush1.msk.msra.mxu0 %vm4445_vm14, %v885_v25  ;;  %vm4446_vm12 = vmmov %vm4438_vm1  ;;  %v1228_v32 = vsel %vm4387_vm5, %v1214_v30, %v1216_v31  ;;  %vm4452_vm6 = vnez %v4406_v61 }
  0xa6   :  { %3511 = vmatpush1.msk.msra.mxu1 %vm4446_vm12, %v887_v23  ;;  %3509 = vmatmul.mubr.msk.f32.vlgmr.msra.gmra.mrb[2].mxu0 %vm4447_vm15, %v3500_v58  ;;  %vm4448_vm0 = vmmov %vm4447_vm15  ;;  %v1261_v34 = vsel %vm3861_vm7, %v1228_v32, 0.0 }
  0xa7   :  { %3512 = vmatmul.mubr.msk.f32.vlgmr.msra.gmra.mrb[2].mxu1 %vm4448_vm0, %v3500_v58  ;;  %1361 = vmatprep.mubr.f32.mxu0 %v3669_v5  ;;  %vm4449_vm13 = vmmov %vm4438_vm1 }
  0xa8   :  { %1432 = vmatprep.mubr.f32.mxu1 %v3669_v5  ;;  %3514 = vmatprep.subr.msk.mxu0 %vm4438_vm1, %v1261_v34  ;;  %v1211_v36 = vpop.permute.xlu0 %1210  ;;  %v1218_v37 = vpop.permute.xlu1 %1217  ;;  %vm4450_vm4 = vmmov %vm4448_vm0 }
  0xa9   :  { %v1243_v38 = vsel %vm4387_vm5, %v1211_v36, %v1214_v30  ;;  %v1229_v45 = vsel %vm4387_vm5, %v1216_v31, %v1218_v37  ;;  %vm4453_vm14 = vmmov %vm4438_vm1 }
  0xaa   :  { %v1260_v41 = vsel %vm3874_vm9, %v1243_v38, 0.0  ;;  %v1262_v10 = vsel %vm4452_vm6, %v1229_v45, 0.0  ;;  %vm4454_vm12 = vmmov %vm4438_vm1  ;;  %vm4457_vm1 = vnez %v4410_v20 }
  0xab   :  { %3515 = vmatpush1.msk.msra.mxu0 %vm4449_vm13, %v1260_v41  ;;  %vm4455_vm15 = vmmov %vm4448_vm0  ;;  %vm4456_vm0 = vnez %v4414_v26  ;;  %vm4458_vm13 = vnez %v4416_v29 }
  0xac   :  { %v1220_v48 = vpop.permute.xlu0 %1219  ;;  %v1222_v49 = vpop.permute.xlu1 %1221  ;;  %3516 = vmatmul.mubr.msk.f32.vlgmr.msra.gmra.mrb[0].mxu0 %vm4450_vm4, %v3513_v40  ;;  %vm4459_vm4 = vnez %v4412_v22 }
  0xad   :  { %v1230_v52 = vsel %vm4387_vm5, %v1218_v37, %v1220_v48  ;;  %1503 = vmatprep.mubr.f32.mxu0 %v3669_v5  ;;  %v1231_v39 = vsel %vm4387_vm5, %v1220_v48, %v1222_v49 }
  0xae   :  { %v1263_v35 = vsel %vm4451_vm8, %v1230_v52, 0.0  ;;  %v1264_v28 = vsel %vm4459_vm4, %v1231_v39, 0.0 }
  0xaf   :  { %3517 = vmatprep.subr.msk.mxu1 %vm4453_vm14, %v1263_v35  ;;  %vm4460_vm14 = vmmov %vm4454_vm12 }
  0xb0   :  { %v1224_v53 = vpop.permute.xlu0 %1223  ;;  %v1226_v58 = vpop.permute.xlu1 %1225  ;;  %3518 = vmatpush1.msk.msra.mxu1 %vm4454_vm12, %v1262_v10 }
  0xb1   :  { %v1232_v60 = vsel %vm4387_vm5, %v1222_v49, %v1224_v53  ;;  %v1233_v12 = vsel %vm4387_vm5, %v1224_v53, %v1226_v58  ;;  %v1234_v51 = vsel %vm4387_vm5, %v1226_v58, %v1211_v36  ;;  %3519 = vmatmul.mubr.msk.f32.vlgmr.msra.gmra.mrb[0].mxu1 %vm4455_vm15, %v3513_v40  ;;  %vm4388_vm15 = vcmask 1039360   ;;  %vm4461_vm5 = vmmov %vm4454_vm12 }
  0xb2   :  { %v1265_v63 = vsel %vm4456_vm0, %v1232_v60, 0.0  ;;  %v1266_v54 = vsel %vm4457_vm1, %v1233_v12, 0.0  ;;  %v1267_v27 = vsel %vm4458_vm13, %v1234_v51, 0.0  ;;  %1574 = vmatprep.mubr.f32.mxu1 %v3669_v5  ;;  %vm4462_vm6 = vmmov %vm4461_vm5  ;;  %vm4463_vm1 = vcmask 31744   ;;  %v3552_v60 = vld [vmem:[%s4362_s0 + $0x30] sm:$0xff] }
  0xb3   :  { %3520 = vmatprep.subr.msk.mxu0 %vm4460_vm14, %v1265_v63  ;;  %3523 = vmatprep.subr.msk.mxu1 %vm4454_vm12, %v1267_v27  ;;  %vm4464_vm13 = vmmov %vm4461_vm5  ;;  %v27_v49 = vand.u32 255, %v3870_v44  ;;  %v31_v53 = vand.u32 255, %v3900_v56 }
  0xb4   :  { %v1905_v62 = vpop.permute.xlu0 %1904  ;;  %v1907_v13 = vpop.permute.xlu1 %1906  ;;  %3521 = vmatpush1.msk.msra.mxu0 %vm4461_vm5, %v1264_v28  ;;  %3524 = vmatpush1.msk.msra.mxu1 %vm4462_vm6, %v1266_v54  ;;  %vm4465_vm0 = vmmov %vm4461_vm5 }
  0xb5   :  { %3522 = vmatmul.mubr.msk.f32.vlgmr.msra.gmra.mrb[2].mxu0 %vm4463_vm1, %v3513_v40  ;;  %3527 = vmatprep.subr.msk.mxu0 %vm4464_vm13, %v3715_v4  ;;  %vm4466_vm4 = vmmov %vm4463_vm1  ;;  %v1920_v14 = vsel %vm4388_vm15, %v1905_v62, %v1907_v13  ;;  %vm4471_vm13 = vnez %v4419_v46 }
  0xb6   :  { %3528 = vmatpush1.msk.msra.mxu0 %vm4465_vm0, %v3705_v2  ;;  %3525 = vmatmul.mubr.msk.f32.vlgmr.msra.gmra.mrb[2].mxu1 %vm4466_vm4, %v3513_v40  ;;  %vm4467_vm5 = vmmov %vm4465_vm0  ;;  %v1953_v2 = vsel %vm4471_vm13, %v1920_v14, 0.0 }
  0xb7   :  { %1674 = vmatprep.mubr.f32.mxu0 %v3669_v5  ;;  %3533 = vmatprep.subr.msk.mxu0 %vm4467_vm5, %v3734_v8  ;;  %vm4468_vm6 = vmmov %vm4465_vm0 }
  0xb8   :  { %v1903_v19 = vpop.permute.xlu0 %1902  ;;  %v1909_v21 = vpop.permute.xlu1 %1908  ;;  %3530 = vmatprep.subr.msk.mxu1 %vm4468_vm6, %v3723_v6  ;;  %1745 = vmatprep.mubr.f32.mxu1 %v3669_v5  ;;  %vm4469_vm0 = vmmov %vm4463_vm1  ;;  %vm4476_vm6 = vnez %v4421_v50 }
  0xb9   :  { %3529 = vmatmul.mubr.msk.f32.vlgmr.msra.gmra.mrb[0].mxu0 %vm4469_vm0, %v3526_v18  ;;  %vm4470_vm1 = vmmov %vm4467_vm5  ;;  %v1919_v4 = vsel %vm4388_vm15, %v1903_v19, %v1905_v62  ;;  %v1921_v6 = vsel %vm4388_vm15, %v1907_v13, %v1909_v21 }
  0xba   :  { %3531 = vmatpush1.msk.msra.mxu1 %vm4470_vm1, %v3695_v0  ;;  %vm4472_vm4 = vmmov %vm4470_vm1  ;;  %1816 = vmatprep.mubr.f32.mxu0 %v3669_v5  ;;  %v25_v0 = vand.u32 255, %v3820_v24 }
  0xbb   :  { %3534 = vmatpush1.msk.msra.mxu0 %vm4472_vm4, %v3728_v7  ;;  %vm4473_vm14 = vmmov %vm4469_vm0  ;;  %v1952_v7 = vsel %vm4476_vm6, %v1919_v4, 0.0  ;;  %vm4477_vm4 = vnez %v4426_v15 }
  0xbc   :  { %3532 = vmatmul.mubr.msk.f32.vlgmr.msra.gmra.mrb[0].mxu1 %vm4473_vm14, %v3526_v18  ;;  %vm4474_vm12 = vmmov %vm4470_vm1  ;;  %v1911_v8 = vpop.permute.xlu0 %1910  ;;  %v1913_v43 = vpop.permute.xlu1 %1912 }
  0xbd   :  { %3540 = vmatprep.subr.msk.mxu0 %vm4474_vm12, %v1953_v2  ;;  %vm4475_vm5 = vmmov %vm4470_vm1  ;;  %1887 = vmatprep.mubr.f32.mxu1 %v3669_v5  ;;  %v1922_v23 = vsel %vm4388_vm15, %v1909_v21, %v1911_v8 }
  0xbe   :  { %3536 = vmatprep.subr.msk.mxu1 %vm4475_vm5, %v3711_v3  ;;  %3535 = vmatmul.mubr.msk.f32.vlgmr.msra.gmra.mrb[2].mxu0 %vm4469_vm0, %v3526_v18  ;;  %v1955_v33 = vsel %vm4477_vm4, %v1922_v23, 0.0  ;;  %vm4478_vm14 = vmmov %vm4470_vm1  ;;  %v3539_v3 = vld [vmem:[%s4362_s0 + $0x28] sm:$0xff]  ;;  %vm4480_vm5 = vnez %v4424_v57 }
  0xbf   :  { %3537 = vmatpush1.msk.msra.mxu1 %vm4470_vm1, %v3700_v1  ;;  %3541 = vmatpush1.msk.msra.mxu0 %vm4478_vm14, %v1952_v7  ;;  %vm4479_vm12 = vmmov %vm4469_vm0  ;;  %v1954_v24 = vsel %vm4480_vm5, %v1921_v6, 0.0  ;;  %vm4482_vm0 = vcmask 1039360   ;;  %vm4177_vm14 = vcmp.lt.s32.totalorder %v25_v0, 240 }
  0xc0   :  { %3538 = vmatmul.mubr.msk.f32.vlgmr.msra.gmra.mrb[2].mxu1 %vm4479_vm12, %v3526_v18  ;;  %vm4481_vm15 = vmmov %vm4470_vm1  ;;  %2053 = vmatprep.mubr.f32.mxu0 %v3669_v5  ;;  %v1923_v1 = vsel %vm4482_vm0, %v1911_v8, %v1913_v43  ;;  %v1915_v25 = vpop.permute.xlu0 %1914  ;;  %v1917_v30 = vpop.permute.xlu1 %1916 }
  0xc1   :  { %3543 = vmatprep.subr.msk.mxu1 %vm4481_vm15, %v1955_v33  ;;  %2124 = vmatprep.mubr.f32.mxu1 %v3669_v5  ;;  %vm4485_vm12 = vmmov %vm4482_vm0  ;;  %vm4488_vm15 = vcmask 31744   ;;  %v1956_v41 = vsel %vm4039_vm3, %v1923_v1, 0.0  ;;  %vm4510_vm3 = vnez %v4416_v29 }
  0xc2   :  { %3544 = vmatpush1.msk.msra.mxu1 %vm4470_vm1, %v1954_v24  ;;  %v1924_v32 = vsel %vm4485_vm12, %v1913_v43, %v1915_v25  ;;  %vm4486_vm4 = vmmov %vm4482_vm0  ;;  %3542 = vmatmul.mubr.msk.f32.vlgmr.msra.gmra.mrb[0].mxu0 %vm4488_vm15, %v3539_v3  ;;  %v3565_v43 = vld [vmem:[%s4362_s0 + $0x38] sm:$0xff] }
  0xc3   :  { %v1925_v34 = vsel %vm4486_vm4, %v1915_v25, %v1917_v30  ;;  %vm4487_vm5 = vmmov %vm4482_vm0  ;;  %v1957_v37 = vsel %vm4049_vm11, %v1924_v32, 0.0  ;;  %2195 = vmatprep.mubr.f32.mxu0 %v3669_v5  ;;  %vm4490_vm4 = vcmask 1043456  }
  0xc4   :  { %v1935_v36 = vsel %vm4487_vm5, %v1917_v30, %v1903_v19  ;;  %v1958_v38 = vsel %vm4031_vm10, %v1925_v34, 0.0  ;;  %vm4489_vm1 = vmmov %vm4488_vm15  ;;  %3546 = vmatprep.subr.msk.mxu0 %vm4490_vm4, %v1957_v37  ;;  %v2284_v45 = vpop.permute.xlu0 %2283  ;;  %v2286_v48 = vpop.permute.xlu1 %2285  ;;  %vm4495_vm10 = vcmask 31744  }
  0xc5   :  { %v1959_v40 = vsel %vm4055_vm2, %v1935_v36, 0.0  ;;  %3545 = vmatmul.mubr.msk.f32.vlgmr.msra.gmra.mrb[0].mxu1 %vm4489_vm1, %v3539_v3  ;;  %vm4491_vm5 = vmmov %vm4490_vm4  ;;  %vm4494_vm1 = vcmask 924672  }
  0xc6   :  { %3549 = vmatprep.subr.msk.mxu1 %vm4491_vm5, %v1959_v40  ;;  %vm2324_vm12 = vmand %vm4177_vm14, %vm3861_vm7  ;;  %v2299_v52 = vsel %vm4494_vm1, %v2284_v45, %v2286_v48  ;;  %2266 = vmatprep.mubr.f32.mxu1 %v3669_v5 }
  0xc7   :  { %vm4492_vm15 = vmmov %vm4490_vm4  ;;  %v2348_v35 = vsel %vm2324_vm12, %v2299_v52, 0.0  ;;  %v3578_v52 = vld [vmem:[%s4362_s0 + $0x40] sm:$0xff] }
  0xc8   :  { %3547 = vmatpush1.msk.msra.mxu0 %vm4492_vm15, %v1956_v41  ;;  %vm4493_vm0 = vmmov %vm4490_vm4  ;;  %v2282_v10 = vpop.permute.xlu0 %2281  ;;  %v2288_v39 = vpop.permute.xlu1 %2287  ;;  %vm4228_vm15 = vcmp.lt.s32.totalorder %v29_v42, 240 }
  0xc9   :  { %3550 = vmatpush1.msk.msra.mxu1 %vm4493_vm0, %v1958_v38  ;;  %3548 = vmatmul.mubr.msk.f32.vlgmr.msra.gmra.mrb[2].mxu0 %vm4495_vm10, %v3539_v3  ;;  %vm4496_vm4 = vmmov %vm4495_vm10  ;;  %v2300_v56 = vsel %vm4494_vm1, %v2286_v48, %v2288_v39 }
  0xca   :  { %3551 = vmatmul.mubr.msk.f32.vlgmr.msra.gmra.mrb[2].mxu1 %vm4496_vm4, %v3539_v3  ;;  %2448 = vmatprep.mubr.f32.mxu0 %v3669_v5  ;;  %vm4497_vm7 = vmmov %vm4493_vm0  ;;  %vm4212_vm0 = vcmp.lt.s32.totalorder %v27_v49, 240  ;;  %vm4233_vm4 = vcmp.lt.s32.totalorder %v31_v53, 240 }
  0xcb   :  { %3553 = vmatprep.subr.msk.mxu0 %vm4497_vm7, %v2348_v35  ;;  %2519 = vmatprep.mubr.f32.mxu1 %v3669_v5  ;;  %vm4500_vm10 = vmmov %vm4494_vm1 }
  0xcc   :  { %v2298_v58 = vsel %vm4500_vm10, %v2282_v10, %v2284_v45  ;;  %vm2326_vm12 = vmand %vm4212_vm0, %vm4451_vm8  ;;  %v2290_v51 = vpop.permute.xlu0 %2289  ;;  %v2292_v63 = vpop.permute.xlu1 %2291  ;;  %vm4507_vm8 = vnez %v4414_v26 }
  0xcd   :  { %v2347_v12 = vsel %vm3874_vm9, %v2298_v58, 0.0  ;;  %vm4505_vm9 = vcmask 31744   ;;  %vm4506_vm7 = vmmov %vm4494_vm1  ;;  %vm4509_vm1 = vcmask 1043456  }
  0xce   :  { %3554 = vmatpush1.msk.msra.mxu0 %vm4491_vm5, %v2347_v12  ;;  %v2301_v47 = vsel %vm4506_vm7, %v2288_v39, %v2290_v51  ;;  %vm2328_vm10 = vmand %vm4228_vm15, %vm4507_vm8  ;;  %vm4508_vm5 = vnez %v4406_v61 }
  0xcf   :  { %3555 = vmatmul.mubr.msk.f32.vlgmr.msra.gmra.mrb[0].mxu0 %vm4505_vm9, %v3552_v60  ;;  %v2350_v11 = vsel %vm2326_vm12, %v2301_v47, 0.0  ;;  %v2349_v27 = vsel %vm4508_vm5, %v2300_v56, 0.0  ;;  %vm2330_vm9 = vmand %vm4233_vm4, %vm4510_vm3  ;;  %vm4516_vm5 = vcmask 31744   ;;  %vm2692_vm3 = vcmask 916480  }
  0xd0   :  { %2590 = vmatprep.mubr.f32.mxu0 %v3669_v5  ;;  %3556 = vmatprep.subr.msk.mxu1 %vm4509_vm1, %v2350_v11  ;;  %vm4511_vm2 = vmmov %vm4506_vm7  ;;  %v2294_v62 = vpop.permute.xlu0 %2293  ;;  %v2296_v13 = vpop.permute.xlu1 %2295 }
  0xd1   :  { %v2302_v28 = vsel %vm4511_vm2, %v2290_v51, %v2292_v63  ;;  %vm4512_vm12 = vmmov %vm4509_vm1  ;;  %vm4517_vm1 = vnez %v4410_v20 }
  0xd2   :  { %3557 = vmatpush1.msk.msra.mxu1 %vm4512_vm12, %v2349_v27  ;;  %vm4513_vm7 = vmmov %vm4511_vm2 }
  0xd3   :  { %v2303_v26 = vsel %vm4513_vm7, %v2292_v63, %v2294_v62  ;;  %vm4514_vm11 = vmmov %vm4511_vm2  ;;  %3558 = vmatmul.mubr.msk.f32.vlgmr.msra.gmra.mrb[0].mxu1 %vm4516_vm5, %v3552_v60 }
  0xd4   :  { %v2304_v18 = vsel %vm4514_vm11, %v2294_v62, %v2296_v13  ;;  %vm4515_vm8 = vmmov %vm4511_vm2  ;;  %v2352_v14 = vsel %vm2328_vm10, %v2303_v26, 0.0  ;;  %2661 = vmatprep.mubr.f32.mxu1 %v3669_v5  ;;  %vm4518_vm2 = vnez %v4412_v22  ;;  %v2679_v2 = vpop.permute.xlu0 %2678  ;;  %v2681_v4 = vpop.permute.xlu1 %2680 }
  0xd5   :  { %v2314_v61 = vsel %vm4515_vm8, %v2296_v13, %v2282_v10  ;;  %v2353_v29 = vsel %vm4517_vm1, %v2304_v18, 0.0  ;;  %v2351_v21 = vsel %vm4518_vm2, %v2302_v28, 0.0  ;;  %3559 = vmatprep.subr.msk.mxu0 %vm4512_vm12, %v2352_v14  ;;  %vm4519_vm7 = vmmov %vm4512_vm12  ;;  %v2694_v20 = vsel %vm2692_vm3, %v2679_v2, %v2681_v4 }
  0xd6   :  { %v2354_v19 = vsel %vm2330_vm9, %v2314_v61, 0.0  ;;  %vm4520_vm11 = vmmov %vm4519_vm7  ;;  %v2727_v22 = vsel %vm4177_vm14, %v2694_v20, 0.0 }
  0xd7   :  { %3562 = vmatprep.subr.msk.mxu1 %vm4519_vm7, %v2354_v19  ;;  %3560 = vmatpush1.msk.msra.mxu0 %vm4520_vm11, %v2351_v21  ;;  %vm4521_vm8 = vmmov %vm4519_vm7 }
  0xd8   :  { %3563 = vmatpush1.msk.msra.mxu1 %vm4521_vm8, %v2353_v29  ;;  %vm4522_vm10 = vmmov %vm4516_vm5  ;;  %v2677_v6 = vpop.permute.xlu0 %2676  ;;  %v2683_v8 = vpop.permute.xlu1 %2682  ;;  %vm3071_vm8 = vcmask 908288  }
  0xd9   :  { %3561 = vmatmul.mubr.msk.f32.vlgmr.msra.gmra.mrb[2].mxu0 %vm4522_vm10, %v3552_v60  ;;  %vm4523_vm9 = vmmov %vm4516_vm5  ;;  %v2693_v0 = vsel %vm2692_vm3, %v2677_v6, %v2679_v2  ;;  %v2695_v24 = vsel %vm2692_vm3, %v2681_v4, %v2683_v8 }
  0xda   :  { %3564 = vmatmul.mubr.msk.f32.vlgmr.msra.gmra.mrb[2].mxu1 %vm4523_vm9, %v3552_v60  ;;  %2827 = vmatprep.mubr.f32.mxu0 %v3669_v5  ;;  %vm4524_vm5 = vmmov %vm4519_vm7 }
  0xdb   :  { %2898 = vmatprep.mubr.f32.mxu1 %v3669_v5  ;;  %3566 = vmatprep.subr.msk.mxu0 %vm4524_vm5, %v2727_v22  ;;  %vm4525_vm1 = vmmov %vm4524_vm5 }
  0xdc   :  { %3567 = vmatpush1.msk.msra.mxu0 %vm4525_vm1, %v2693_v0  ;;  %vm4526_vm2 = vmmov %vm4523_vm9  ;;  %v2685_v7 = vpop.permute.xlu0 %2684  ;;  %v2687_v23 = vpop.permute.xlu1 %2686 }
  0xdd   :  { %3568 = vmatmul.mubr.msk.f32.vlgmr.msra.gmra.mrb[0].mxu0 %vm4526_vm2, %v3565_v43  ;;  %v2696_v33 = vsel %vm2692_vm3, %v2683_v8, %v2685_v7  ;;  %vm4527_vm12 = vmmov %vm4525_vm1  ;;  %v2697_v37 = vsel %vm2692_vm3, %v2685_v7, %v2687_v23 }
  0xde   :  { %2969 = vmatprep.mubr.f32.mxu0 %v3669_v5  ;;  %v2729_v3 = vsel %vm4212_vm0, %v2696_v33, 0.0  ;;  %vm4528_vm7 = vmmov %vm4525_vm1 }
  0xdf   :  { %3569 = vmatprep.subr.msk.mxu1 %vm4527_vm12, %v2729_v3  ;;  %vm4529_vm11 = vmmov %vm4526_vm2 }
  0xe0   :  { %v2689_v1 = vpop.permute.xlu0 %2688  ;;  %v2691_v25 = vpop.permute.xlu1 %2690  ;;  %3570 = vmatpush1.msk.msra.mxu1 %vm4528_vm7, %v2695_v24  ;;  %vm4530_vm10 = vmmov %vm4525_vm1 }
  0xe1   :  { %v2698_v30 = vsel %vm2692_vm3, %v2687_v23, %v2689_v1  ;;  %v2709_v32 = vsel %vm2692_vm3, %v2691_v25, %v2677_v6  ;;  %3571 = vmatmul.mubr.msk.f32.vlgmr.msra.gmra.mrb[0].mxu1 %vm4529_vm11, %v3565_v43  ;;  %v2699_v38 = vsel %vm2692_vm3, %v2689_v1, %v2691_v25  ;;  %vm4531_vm9 = vmmov %vm4525_vm1 }
  0xe2   :  { %v2731_v34 = vsel %vm4228_vm15, %v2698_v30, 0.0  ;;  %v2733_v36 = vsel %vm4233_vm4, %v2709_v32, 0.0  ;;  %3040 = vmatprep.mubr.f32.mxu1 %v3669_v5  ;;  %vm3090_vm5 = vmand %vm4177_vm14, %vm4471_vm13  ;;  %vm4537_vm14 = vnez %v4426_v15 }
  0xe3   :  { %3572 = vmatprep.subr.msk.mxu0 %vm4530_vm10, %v2731_v34  ;;  %3575 = vmatprep.subr.msk.mxu1 %vm4531_vm9, %v2733_v36  ;;  %vm4532_vm2 = vmmov %vm4525_vm1 }
  0xe4   :  { %v3058_v40 = vpop.permute.xlu0 %3057  ;;  %v3060_v41 = vpop.permute.xlu1 %3059  ;;  %3573 = vmatpush1.msk.msra.mxu0 %vm4525_vm1, %v2697_v37  ;;  %3576 = vmatpush1.msk.msra.mxu1 %vm4532_vm2, %v2699_v38  ;;  %vm4533_vm12 = vmmov %vm4529_vm11 }
  0xe5   :  { %v3073_v45 = vsel %vm3071_vm8, %v3058_v40, %v3060_v41  ;;  %3574 = vmatmul.mubr.msk.f32.vlgmr.msra.gmra.mrb[2].mxu0 %vm4533_vm12, %v3565_v43  ;;  %vm4534_vm3 = vmmov %vm4529_vm11 }
  0xe6   :  { %3577 = vmatmul.mubr.msk.f32.vlgmr.msra.gmra.mrb[2].mxu1 %vm4534_vm3, %v3565_v43  ;;  %v3114_v48 = vsel %vm3090_vm5, %v3073_v45, 0.0  ;;  %3214 = vmatprep.mubr.f32.mxu0 %v3669_v5  ;;  %vm4535_vm7 = vmmov %vm4525_vm1  ;;  %vm4541_vm5 = vnez %v4434_v59 }
  0xe7   :  { %3285 = vmatprep.mubr.f32.mxu1 %v3669_v5  ;;  %3579 = vmatprep.subr.msk.mxu0 %vm4535_vm7, %v3114_v48  ;;  %vm4536_vm13 = vmmov %vm4525_vm1 }
  0xe8   :  { %v3056_v46 = vpop.permute.xlu0 %3055  ;;  %v3062_v31 = vpop.permute.xlu1 %3061  ;;  %vm3092_vm11 = vmand %vm4212_vm0, %vm4537_vm14 }
  0xe9   :  { %v3072_v49 = vsel %vm3071_vm8, %v3056_v46, %v3058_v40  ;;  %v3074_v42 = vsel %vm3071_vm8, %v3060_v41, %v3062_v31  ;;  %vm4538_vm10 = vmmov %vm4534_vm3 }
  0xea   :  { %v3113_v35 = vsel %vm4476_vm6, %v3072_v49, 0.0  ;;  %vm4539_vm6 = vnez %v4424_v57  ;;  %vm4540_vm9 = vmmov %vm4525_vm1  ;;  %vm4542_vm1 = vnez %v4436_v16 }
  0xeb   :  { %3580 = vmatpush1.msk.msra.mxu0 %vm4536_vm13, %v3113_v35  ;;  %v3115_v50 = vsel %vm4539_vm6, %v3074_v42, 0.0  ;;  %vm3094_vm0 = vmand %vm4228_vm15, %vm4541_vm5  ;;  %vm4544_vm15 = vnez %v4431_v17  ;;  %vm3469_vm6 = vcmask 15368  }
  0xec   :  { %v3064_v10 = vpop.permute.xlu0 %3063  ;;  %v3066_v39 = vpop.permute.xlu1 %3065  ;;  %3581 = vmatmul.mubr.msk.f32.vlgmr.msra.gmra.mrb[0].mxu0 %vm4538_vm10, %v3578_v52  ;;  %vm3096_vm2 = vmand %vm4233_vm4, %vm4542_vm1 }
  0xed   :  { %v3075_v53 = vsel %vm3071_vm8, %v3062_v31, %v3064_v10  ;;  %3356 = vmatprep.mubr.f32.mxu0 %v3669_v5  ;;  %v3076_v15 = vsel %vm3071_vm8, %v3064_v10, %v3066_v39  ;;  %vm4543_vm12 = vmmov %vm4535_vm7  ;;  %vm4545_vm7 = vnez %v4428_v9 }
  0xee   :  { %v3116_v58 = vsel %vm3092_vm11, %v3075_v53, 0.0  ;;  %v3117_v16 = vsel %vm4544_vm15, %v3076_v15, 0.0  ;;  %vm4546_vm4 = vmmov %vm4540_vm9 }
  0xef   :  { %3582 = vmatprep.subr.msk.mxu1 %vm4540_vm9, %v3116_v58  ;;  %vm4547_vm13 = vmmov %vm4546_vm4  ;;  %vm4552_vm9 = vcmask 7168  }
  0xf0   :  { %v3068_v44 = vpop.permute.xlu0 %3067  ;;  %3583 = vmatpush1.msk.msra.mxu1 %vm4543_vm12, %v3115_v50  ;;  %vm4548_vm14 = vmmov %vm4546_vm4 }
  0xf1   :  { %v3077_v57 = vsel %vm3071_vm8, %v3066_v39, %v3068_v44  ;;  %v3070_v60 = vpop.permute.xlu1 %3069  ;;  %3584 = vmatmul.mubr.msk.f32.vlgmr.msra.gmra.mrb[0].mxu1 %vm4534_vm3, %v3578_v52  ;;  %vm4549_vm11 = vmmov %vm4546_vm4 }
  0xf2   :  { %v3118_v12 = vsel %vm3094_vm0, %v3077_v57, 0.0  ;;  %v3078_v59 = vsel %vm3071_vm8, %v3068_v44, %v3070_v60  ;;  %v3088_v55 = vsel %vm3071_vm8, %v3070_v60, %v3056_v46  ;;  %3427 = vmatprep.mubr.f32.mxu1 %v3669_v5  ;;  %vm4550_vm10 = vmmov %vm4534_vm3 }
  0xf3   :  { %v3119_v56 = vsel %vm4545_vm7, %v3078_v59, 0.0  ;;  %v3120_v51 = vsel %vm3096_vm2, %v3088_v55, 0.0  ;;  %3585 = vmatprep.subr.msk.mxu0 %vm4546_vm4, %v3118_v12  ;;  %vm4551_vm8 = vmmov %vm4534_vm3 }
  0xf4   :  { %3588 = vmatprep.subr.msk.mxu1 %vm4547_vm13, %v3120_v51  ;;  %3586 = vmatpush1.msk.msra.mxu0 %vm4548_vm14, %v3117_v16 }
  0xf5   :  { %3589 = vmatpush1.msk.msra.mxu1 %vm4549_vm11, %v3119_v56  ;;  %3587 = vmatmul.mubr.msk.f32.vlgmr.msra.gmra.mrb[2].mxu0 %vm4550_vm10, %v3578_v52 }
  0xf6   :  { %3590 = vmatmul.mubr.msk.f32.vlgmr.msra.gmra.mrb[2].mxu1 %vm4551_vm8, %v3578_v52 }
 0x1bf   :  { %v3216_v5 = vpop.f32.mrb[0].mxu0 }
 0x1c0   :  { %v3452_v63 = vmul.f32 %v3216_v5, %v3216_v5  ;;  %v3218_v17 = vpop.f32.mrb[1].mxu0 }
 0x1c1   :  { %v3442_v54 = vadd.f32 %v3218_v17, %v3216_v5  ;;  %v3453_v47 = vmul.f32 %v3218_v17, %v3218_v17 }
 0x1c3   :  { %v3460_v9 = vadd.f32 %v3453_v47, %v3452_v63 }
 0x1c4   :  { %v3287_v11 = vpop.f32.mrb[0].mxu1 }
 0x1c5   :  { %v3443_v27 = vadd.f32 %v3442_v54, %v3287_v11  ;;  %v3454_v28 = vmul.f32 %v3287_v11, %v3287_v11  ;;  %v3289_v62 = vpop.f32.mrb[1].mxu1 }
 0x1c6   :  { %v3455_v13 = vmul.f32 %v3289_v62, %v3289_v62 }
 0x1c7   :  { %v3461_v26 = vadd.f32 %v3460_v9, %v3454_v28  ;;  %v3444_v18 = vadd.f32 %v3443_v27, %v3289_v62 }
 0x1c8   :  { %v3358_v61 = vpop.f32.mrb[2].mxu0 }
 0x1c9   :  { %v3462_v14 = vadd.f32 %v3461_v26, %v3455_v13  ;;  %v3445_v29 = vadd.f32 %v3444_v18, %v3358_v61  ;;  %v3456_v19 = vmul.f32 %v3358_v61, %v3358_v61  ;;  %v3429_v21 = vpop.f32.mrb[2].mxu1  ;;  %v3360_v2 = vpop.f32.mrb[3].mxu0 }
 0x1ca   :  { %v3457_v4 = vmul.f32 %v3360_v2, %v3360_v2  ;;  %v3431_v20 = vpop.f32.mrb[3].mxu1  ;;  %v3458_v8 = vmul.f32 %v3429_v21, %v3429_v21 }
 0x1cb   :  { %v3463_v22 = vadd.f32 %v3462_v14, %v3456_v19  ;;  %v3446_v6 = vadd.f32 %v3445_v29, %v3360_v2  ;;  %v3459_v23 = vmul.f32 %v3431_v20, %v3431_v20 }
 0x1cd   :  { %v3464_v43 = vadd.f32 %v3463_v22, %v3457_v4  ;;  %v3447_v0 = vadd.f32 %v3446_v6, %v3429_v21 }
 0x1cf   :  { %v3448_v7 = vadd.f32 %v3447_v0, %v3431_v20  ;;  %v3465_v33 = vadd.f32 %v3464_v43, %v3458_v8 }
 0x1d1   :  { %3449 = vadd.xlane.f32.xlu0 %v3448_v7  ;;  %v3466_v3 = vadd.f32 %v3465_v33, %v3459_v23 }
 0x1d3   :  { %3467 = vadd.xlane.f32.xlu1 %v3466_v3 }
 0x25e   :  { %v3450_v24 = vpop.xlane.xlu0 %3449 }
 0x25f   :  { %3451 = vst.msk [vmem:[%s4363_s2] sm:$0xff] %vm4552_vm9, %v3450_v24 }
 0x260   :  { %v3468_v1 = vpop.xlane.xlu1 %3467 }
 0x261   :  { %3470 = vst.msk [vmem:[%s4363_s2] sm:$0xff] %vm3469_vm6, %v3468_v1 }

// kernel: layer_t_wrapper_forward.3
= control target key start
LH: loop header
LB: loop body
LE: loop exit
PB: predicated region body
PF: predicated region fallthrough
CT: control target
= control target key end

     0   :  { %s3690_s18 = smov 16   ;;  %v3691_v5 = vmov 0.0   ;;  %s3692_s21 = smov 17   ;;  %v18_v9 = vlaneseq  ;;  %vm151_vm0 = vcmask 130048   ;;  %v3699_v19 = vmov 0   ;;  %s4412_s2 = inlined_call_operand.vmem [shape: f32[4,1024], index: 2, kind: input, shape index: {}]   ;;  %s4413_s1 = inlined_call_operand.vmem [shape: f32[9,8,4], index: 1, kind: input, shape index: {}]   ;;  %s4414_s0 = inlined_call_operand.vmem [shape: f32[8,2], index: 0, kind: input, shape index: {}]   ;;  %s4415_s3 = inlined_call_operand.vmem [shape: f32[4,8,256], index: 3, kind: output, shape index: {}]  }
   0x1   :  { %v3724_v0 = vld [vmem:[%s4412_s2 + $0x8] sm:$0xff]  ;;  %v3729_v1 = vld [vmem:[%s4412_s2 + $0x18] sm:$0xff]  ;;  %v3734_v2 = vld [vmem:[%s4412_s2] sm:$0xff]  ;;  %287 = vmatprep.mubr.f32.mxu0 %v3691_v5  ;;  %358 = vmatprep.mubr.f32.mxu1 %v3691_v5  ;;  %s3694_s22 = smov 1   ;;  %s3695_s23 = smov 127   ;;  %v3700_v20 = vmov 1  }
   0x2   :  { %141 = vrot.lane.b32.xlu1 %v3724_v0, %s3690_s18  ;;  %137 = vrot.lane.b32.xlu0 %v3734_v2, %s3690_s18  ;;  %v3740_v3 = vcombine.high %v3729_v1, %v3729_v1  ;;  %v3744_v4 = vcombine.high %v3734_v2, %v3734_v2  ;;  %v3752_v6 = vcombine.high %v3724_v0, %v3724_v0  ;;  %v3757_v7 = vld [vmem:[%s4412_s2 + $0x10] sm:$0xff]  ;;  %s3693_s2 = smov 15   ;;  %s3696_s24 = smov 113   ;;  %v3815_v10 = vand.u32 127, %v18_v9  ;;  %v3486_v26 = vld [vmem:[%s4413_s1 + $0x8] sm:$0xff] }
   0x3   :  { %v3763_v8 = vcombine.high %v3757_v7, %v3757_v7  ;;  %s3697_s25 = smov 112   ;;  %s3698_s26 = smov 111   ;;  %3683 = vset.pattern.permute.xlu0 %v3699_v19  ;;  %3684 = vset.pattern.permute.xlu1 %v3700_v20  ;;  %vm4416_vm2 = vcmask 1043456   ;;  %vm4421_vm3 = vcmask 31744   ;;  %vm68_vm7 = vcmask 138240   ;;  %v3445_v51 = vld [vmem:[%s4414_s0] sm:$0xff] }
   0x4   :  { %v27_v11 = vand.u32 255, %v3815_v10  ;;  %v3823_v12 = vadd.s32 256, %v3815_v10  ;;  %v3834_v16 = vadd.s32 512, %v3815_v10  ;;  %v3838_v18 = vadd.s32 768, %v3815_v10 }
   0x5   :  { %v3853_v27 = vadd.s32 128, %v3815_v10  ;;  %v3885_v40 = vadd.s32 384, %v3815_v10  ;;  %v35_v55 = vand.u32 15, %v3815_v10  ;;  %v3938_v59 = vadd.s32 640, %v3815_v10 }
   0x6   :  { %134 = vrot.lane.b32.xlu0 %v3740_v3, %s3690_s18  ;;  %139 = vrot.lane.b32.xlu1 %v3744_v4, %s3690_s18  ;;  %vm3829_vm1 = vcmp.ge.s32.totalorder %v27_v11, 16  ;;  %v29_v17 = vand.u32 255, %v3823_v12  ;;  %v31_v29 = vand.u32 255, %v3834_v16  ;;  %v33_v31 = vand.u32 255, %v3838_v18 }
   0x7   :  { %v36_v36 = vand.u32 15, %v3853_v27  ;;  %v37_v43 = vand.u32 15, %v3823_v12  ;;  %v38_v50 = vand.u32 15, %v3885_v40  ;;  %v3941_v60 = vadd.s32 896, %v3815_v10 }
   0x8   :  { %vm3858_vm4 = vcmp.ge.s32.totalorder %v29_v17, 16  ;;  %vm3872_vm5 = vcmp.ge.s32.totalorder %v31_v29, 16  ;;  %vm3880_vm6 = vcmp.ge.s32.totalorder %v33_v31, 16  ;;  %vm3945_vm12 = vcmp.ge.s32.totalorder %v35_v55, 1 }
   0x9   :  { %vm3904_vm8 = vcmp.ge.s32.totalorder %v36_v36, 1  ;;  %vm3914_vm9 = vcmp.ge.s32.totalorder %v37_v43, 1  ;;  %vm3933_vm11 = vcmp.ge.s32.totalorder %v38_v50, 1  ;;  %v4454_v63 = vmov 0  ;;  %vm101_vm13 = vmand %vm3829_vm1, %vm3945_vm12 }
   0xa   :  { %143 = vrot.lane.b32.xlu0 %v3752_v6, %s3690_s18  ;;  %145 = vrot.lane.b32.xlu1 %v3757_v7, %s3690_s18  ;;  %vm103_vm10 = vmand %vm3858_vm4, %vm3914_vm9  ;;  %v4455_v63 = vsel %vm3945_vm12, 4294967295, %v4454_v63  ;;  %v41_v9 = vand.u32 15, %v3838_v18  ;;  %v4460_v31 = vmov 0  ;;  %vm4017_vm12 = vcmp.le.s32.totalorder %v36_v36, 14 }
   0xb   :  { %v4475_v12 = vmov 0  ;;  %v4489_v18 = vmov 0 }
   0xc   :  { %vm3969_vm14 = vcmp.ge.s32.totalorder %v41_v9, 1 }
   0xe   :  { %147 = vrot.lane.b32.xlu0 %v3763_v8, %s3690_s18  ;;  %149 = vrot.lane.b32.xlu1 %v3729_v1, %s3690_s18 }
  0x12   :  { %54 = vrot.lane.b32.xlu0 %v3734_v2, %s3692_s21  ;;  %56 = vrot.lane.b32.xlu1 %v3744_v4, %s3692_s21 }
  0x16   :  { %58 = vrot.lane.b32.xlu0 %v3724_v0, %s3692_s21  ;;  %60 = vrot.lane.b32.xlu1 %v3752_v6, %s3692_s21 }
  0x1a   :  { %45 = vrot.lane.b32.xlu0 %v3740_v3, %s3692_s21  ;;  %62 = vrot.lane.b32.xlu1 %v3757_v7, %s3692_s21 }
  0x1e   :  { %64 = vrot.lane.b32.xlu0 %v3763_v8, %s3692_s21  ;;  %66 = vrot.lane.b32.xlu1 %v3729_v1, %s3692_s21 }
  0x22   :  { %821 = vrot.lane.b32.xlu0 %v3734_v2, %s3693_s2  ;;  %823 = vrot.lane.b32.xlu1 %v3744_v4, %s3693_s2 }
  0x26   :  { %825 = vrot.lane.b32.xlu0 %v3724_v0, %s3693_s2  ;;  %827 = vrot.lane.b32.xlu1 %v3752_v6, %s3693_s2 }
  0x2a   :  { %818 = vrot.lane.b32.xlu0 %v3740_v3, %s3693_s2  ;;  %829 = vrot.lane.b32.xlu1 %v3757_v7, %s3693_s2 }
  0x2e   :  { %831 = vrot.lane.b32.xlu0 %v3763_v8, %s3693_s2  ;;  %833 = vrot.lane.b32.xlu1 %v3729_v1, %s3693_s2 }
  0x32   :  { %1216 = vrot.lane.b32.xlu0 %v3734_v2, %s3694_s22  ;;  %1218 = vrot.lane.b32.xlu1 %v3744_v4, %s3694_s22 }
  0x36   :  { %1220 = vrot.lane.b32.xlu0 %v3724_v0, %s3694_s22  ;;  %1222 = vrot.lane.b32.xlu1 %v3752_v6, %s3694_s22 }
  0x3a   :  { %1213 = vrot.lane.b32.xlu0 %v3740_v3, %s3694_s22  ;;  %1224 = vrot.lane.b32.xlu1 %v3757_v7, %s3694_s22 }
  0x3e   :  { %1226 = vrot.lane.b32.xlu0 %v3763_v8, %s3694_s22  ;;  %1228 = vrot.lane.b32.xlu1 %v3729_v1, %s3694_s22 }
  0x42   :  { %1907 = vrot.lane.b32.xlu0 %v3744_v4, %s3695_s23  ;;  %1909 = vrot.lane.b32.xlu1 %v3724_v0, %s3695_s23 }
  0x46   :  { %1911 = vrot.lane.b32.xlu0 %v3752_v6, %s3695_s23  ;;  %1913 = vrot.lane.b32.xlu1 %v3757_v7, %s3695_s23 }
  0x4a   :  { %1905 = vrot.lane.b32.xlu0 %v3734_v2, %s3695_s23  ;;  %1915 = vrot.lane.b32.xlu1 %v3763_v8, %s3695_s23 }
  0x4e   :  { %1917 = vrot.lane.b32.xlu0 %v3729_v1, %s3695_s23  ;;  %1919 = vrot.lane.b32.xlu1 %v3740_v3, %s3695_s23 }
  0x52   :  { %2286 = vrot.lane.b32.xlu0 %v3744_v4, %s3696_s24  ;;  %2288 = vrot.lane.b32.xlu1 %v3724_v0, %s3696_s24 }
  0x56   :  { %2290 = vrot.lane.b32.xlu0 %v3752_v6, %s3696_s24  ;;  %2292 = vrot.lane.b32.xlu1 %v3757_v7, %s3696_s24 }
  0x5a   :  { %2284 = vrot.lane.b32.xlu0 %v3734_v2, %s3696_s24  ;;  %2294 = vrot.lane.b32.xlu1 %v3763_v8, %s3696_s24 }
  0x5e   :  { %2296 = vrot.lane.b32.xlu0 %v3729_v1, %s3696_s24  ;;  %2298 = vrot.lane.b32.xlu1 %v3740_v3, %s3696_s24 }
  0x62   :  { %2681 = vrot.lane.b32.xlu0 %v3744_v4, %s3697_s25  ;;  %2683 = vrot.lane.b32.xlu1 %v3724_v0, %s3697_s25 }
  0x66   :  { %2685 = vrot.lane.b32.xlu0 %v3752_v6, %s3697_s25  ;;  %2687 = vrot.lane.b32.xlu1 %v3757_v7, %s3697_s25 }
  0x6a   :  { %2679 = vrot.lane.b32.xlu0 %v3734_v2, %s3697_s25  ;;  %2689 = vrot.lane.b32.xlu1 %v3763_v8, %s3697_s25 }
  0x6e   :  { %2691 = vrot.lane.b32.xlu0 %v3729_v1, %s3697_s25  ;;  %2693 = vrot.lane.b32.xlu1 %v3740_v3, %s3697_s25 }
  0x72   :  { %3060 = vrot.lane.b32.xlu0 %v3744_v4, %s3698_s26  ;;  %3062 = vrot.lane.b32.xlu1 %v3724_v0, %s3698_s26 }
  0x74   :  { %v142_v13 = vpop.permute.xlu1 %141  ;;  %v138_v14 = vpop.permute.xlu0 %137 }
  0x76   :  { %3064 = vrot.lane.b32.xlu0 %v3752_v6, %s3698_s26  ;;  %3066 = vrot.lane.b32.xlu1 %v3757_v7, %s3698_s26 }
  0x78   :  { %v135_v21 = vpop.permute.xlu0 %134  ;;  %v140_v22 = vpop.permute.xlu1 %139 }
  0x79   :  { %v167_v23 = vsel %vm151_vm0, %v135_v21, %v138_v14  ;;  %v152_v24 = vsel %vm151_vm0, %v138_v14, %v140_v22  ;;  %v153_v28 = vsel %vm151_vm0, %v140_v22, %v142_v13  ;;  %v39_v14 = vand.u32 15, %v3834_v16 }
  0x7a   :  { %3058 = vrot.lane.b32.xlu0 %v3734_v2, %s3698_s26  ;;  %3068 = vrot.lane.b32.xlu1 %v3763_v8, %s3698_s26  ;;  %v184_v25 = vsel %vm3829_vm1, %v167_v23, 0.0  ;;  %v186_v35 = vsel %vm3858_vm4, %v153_v28, 0.0  ;;  %v40_v22 = vand.u32 15, %v3938_v59  ;;  %v42_v23 = vand.u32 15, %v3941_v60 }
  0x7b   :  { %3487 = vmatprep.subr.msk.mxu0 %vm4416_vm2, %v152_v24  ;;  %vm3976_vm15 = vcmp.ge.s32.totalorder %v39_v14, 1  ;;  %v4458_v28 = vmov 0  ;;  %v4491_v16 = vmov 0 }
  0x7c   :  { %3488 = vmatpush1.msk.msra.mxu0 %vm4416_vm2, %v184_v25  ;;  %v144_v32 = vpop.permute.xlu0 %143  ;;  %v146_v33 = vpop.permute.xlu1 %145  ;;  %v4459_v28 = vsel %vm3976_vm15, 4294967295, %v4458_v28 }
  0x7d   :  { %v154_v34 = vsel %vm151_vm0, %v142_v13, %v144_v32  ;;  %3489 = vmatmul.mubr.msk.f32.vlgmr.msra.gmra.mrb[0].mxu0 %vm4421_vm3, %v3486_v26  ;;  %v155_v38 = vsel %vm151_vm0, %v144_v32, %v146_v33  ;;  %v4462_v32 = vmov 0 }
  0x7e   :  { %3490 = vmatprep.subr.msk.mxu1 %vm4416_vm2, %v154_v34  ;;  %3070 = vrot.lane.b32.xlu0 %v3729_v1, %s3698_s26  ;;  %v188_v47 = vsel %vm3872_vm5, %v155_v38, 0.0 }
  0x7f   :  { %3072 = vrot.lane.b32.xlu1 %v3740_v3, %s3698_s26  ;;  %3491 = vmatpush1.msk.msra.mxu1 %vm4416_vm2, %v186_v35 }
  0x80   :  { %v148_v41 = vpop.permute.xlu0 %147  ;;  %v150_v42 = vpop.permute.xlu1 %149  ;;  %3492 = vmatmul.mubr.msk.f32.vlgmr.msra.gmra.mrb[0].mxu1 %vm4421_vm3, %v3486_v26  ;;  %429 = vmatprep.mubr.f32.mxu0 %v3691_v5 }
  0x81   :  { %v156_v44 = vsel %vm151_vm0, %v146_v33, %v148_v41  ;;  %v157_v45 = vsel %vm151_vm0, %v148_v41, %v150_v42  ;;  %v158_v46 = vsel %vm151_vm0, %v150_v42, %v135_v21  ;;  %500 = vmatprep.mubr.f32.mxu1 %v3691_v5  ;;  %v133_v21 = vld [vmem:[%s4413_s1] sm:$0xff]  ;;  %vm3985_vm0 = vcmp.ge.s32.totalorder %v40_v22, 1 }
  0x82   :  { %v190_v48 = vsel %vm3880_vm6, %v157_v45, 0.0  ;;  %3493 = vmatprep.subr.msk.mxu0 %vm4416_vm2, %v156_v44  ;;  %3496 = vmatprep.subr.msk.mxu1 %vm4416_vm2, %v158_v46  ;;  %v4461_v31 = vsel %vm3985_vm0, 4294967295, %v4460_v31 }
  0x83   :  { %3494 = vmatpush1.msk.msra.mxu0 %vm4416_vm2, %v188_v47  ;;  %3497 = vmatpush1.msk.msra.mxu1 %vm4416_vm2, %v190_v48  ;;  %v4466_v48 = vmov 0 }
  0x84   :  { %v55_v52 = vpop.permute.xlu0 %54  ;;  %v57_v53 = vpop.permute.xlu1 %56  ;;  %3498 = vmatmul.mubr.msk.f32.vlgmr.msra.gmra.mrb[2].mxu1 %vm4421_vm3, %v3486_v26  ;;  %3495 = vmatmul.mubr.msk.f32.vlgmr.msra.gmra.mrb[2].mxu0 %vm4421_vm3, %v3486_v26  ;;  %v4456_v26 = vmov 0  ;;  %v4467_v48 = vsel %vm4017_vm12, 4294967295, %v4466_v48 }
  0x85   :  { %v69_v56 = vsel %vm68_vm7, %v55_v52, %v57_v53  ;;  %598 = vmatprep.mubr.f32.mxu0 %v3691_v5  ;;  %669 = vmatprep.mubr.f32.mxu1 %v3691_v5  ;;  %v4457_v26 = vsel %vm3969_vm14, 4294967295, %v4456_v26 }
  0x86   :  { %v126_v57 = vsel %vm3904_vm8, %v69_v56, 0.0  ;;  %3448 = vperm.xlu0 %3683, %v3445_v51   ;;  %3460 = vperm.xlu1 %3684, %v3445_v51  }
  0x87   :  { %3499 = vmatprep.subr.msk.mxu0 %vm4416_vm2, %v126_v57 }
  0x88   :  { %v59_v61 = vpop.permute.xlu0 %58  ;;  %v61_v62 = vpop.permute.xlu1 %60 }
  0x89   :  { %v70_v11 = vsel %vm68_vm7, %v57_v53, %v59_v61  ;;  %v71_v13 = vsel %vm68_vm7, %v59_v61, %v61_v62  ;;  %v4470_v53 = vmov 0  ;;  %v4477_v61 = vmov 0 }
  0x8a   :  { %v127_v17 = vsel %vm103_vm10, %v70_v11, 0.0  ;;  %v128_v19 = vsel %vm3933_vm11, %v71_v13, 0.0  ;;  %3685 = vset.pattern.permute.xlu0 %v3700_v20  ;;  %vm3991_vm10 = vcmp.ge.s32.totalorder %v42_v23, 1 }
  0x8b   :  { %3502 = vmatprep.subr.msk.mxu1 %vm4416_vm2, %v128_v19  ;;  %v4463_v32 = vsel %vm3991_vm10, 4294967295, %v4462_v32 }
  0x8c   :  { %v46_v24 = vpop.permute.xlu0 %45  ;;  %v63_v25 = vpop.permute.xlu1 %62  ;;  %3503 = vmatpush1.msk.msra.mxu1 %vm4416_vm2, %v127_v17  ;;  %v4483_v17 = vmov 0 }
  0x8d   :  { %v84_v20 = vsel %vm68_vm7, %v46_v24, %v55_v52  ;;  %3504 = vmatmul.mubr.msk.f32.vlgmr.msra.gmra.mrb[0].mxu1 %vm4421_vm3, %v133_v21  ;;  %v72_v33 = vsel %vm68_vm7, %v61_v62, %v63_v25 }
  0x8e   :  { %v125_v29 = vsel %vm101_vm13, %v84_v20, 0.0  ;;  %811 = vmatprep.mubr.f32.mxu1 %v3691_v5  ;;  %vm107_vm13 = vmand %vm3880_vm6, %vm3969_vm14  ;;  %vm4464_vm14 = vcmask 1043456  }
  0x8f   :  { %3500 = vmatpush1.msk.msra.mxu0 %vm4416_vm2, %v125_v29  ;;  %vm105_vm2 = vmand %vm3872_vm5, %vm3976_vm15  ;;  %vm4025_vm15 = vcmp.le.s32.totalorder %v37_v43, 14 }
  0x90   :  { %v65_v34 = vpop.permute.xlu0 %64  ;;  %v67_v35 = vpop.permute.xlu1 %66  ;;  %3501 = vmatmul.mubr.msk.f32.vlgmr.msra.gmra.mrb[0].mxu0 %vm4421_vm3, %v133_v21  ;;  %v129_v47 = vsel %vm105_vm2, %v72_v33, 0.0  ;;  %vm4465_vm3 = vmmov %vm4464_vm14  ;;  %v4471_v53 = vsel %vm4025_vm15, 4294967295, %v4470_v53  ;;  %vm4472_vm2 = vcmask 121856  }
  0x91   :  { %v73_v38 = vsel %vm68_vm7, %v63_v25, %v65_v34  ;;  %v74_v41 = vsel %vm68_vm7, %v65_v34, %v67_v35  ;;  %v75_v42 = vsel %vm68_vm7, %v67_v35, %v46_v24  ;;  %740 = vmatprep.mubr.f32.mxu0 %v3691_v5  ;;  %vm4468_vm7 = vmmov %vm4465_vm3 }
  0x92   :  { %v130_v44 = vsel %vm3985_vm0, %v73_v38, 0.0  ;;  %v131_v45 = vsel %vm107_vm13, %v74_v41, 0.0  ;;  %v132_v46 = vsel %vm3991_vm10, %v75_v42, 0.0  ;;  %vm4469_vm13 = vmmov %vm4465_vm3 }
  0x93   :  { %3505 = vmatprep.subr.msk.mxu0 %vm4464_vm14, %v130_v44  ;;  %3508 = vmatprep.subr.msk.mxu1 %vm4465_vm3, %v132_v46  ;;  %vm4473_vm3 = vcmask 31744  }
  0x94   :  { %v822_v51 = vpop.permute.xlu0 %821  ;;  %v824_v52 = vpop.permute.xlu1 %823  ;;  %3506 = vmatpush1.msk.msra.mxu0 %vm4468_vm7, %v129_v47  ;;  %3509 = vmatpush1.msk.msra.mxu1 %vm4469_vm13, %v131_v45  ;;  %vm4474_vm14 = vmmov %vm4473_vm3 }
  0x95   :  { %v836_v56 = vsel %vm4472_vm2, %v822_v51, %v824_v52  ;;  %3510 = vmatmul.mubr.msk.f32.vlgmr.msra.gmra.mrb[2].mxu1 %vm4473_vm3, %v133_v21  ;;  %3507 = vmatmul.mubr.msk.f32.vlgmr.msra.gmra.mrb[2].mxu0 %vm4474_vm14, %v133_v21  ;;  %vm862_vm13 = vmand %vm3858_vm4, %vm4025_vm15  ;;  %vm4043_vm2 = vcmp.le.s32.totalorder %v38_v50, 14  ;;  %vm4049_vm3 = vcmp.le.s32.totalorder %v35_v55, 14  ;;  %vm4479_vm14 = vcmask 121856   ;;  %v3511_v50 = vld [vmem:[%s4413_s1 + $0x10] sm:$0xff] }
  0x96   :  { %v885_v36 = vsel %vm4017_vm12, %v836_v56, 0.0  ;;  %985 = vmatprep.mubr.f32.mxu0 %v3691_v5  ;;  %1056 = vmatprep.mubr.f32.mxu1 %v3691_v5  ;;  %v4476_v12 = vsel %vm4043_vm2, 4294967295, %v4475_v12  ;;  %v4478_v61 = vsel %vm4049_vm3, 4294967295, %v4477_v61  ;;  %vm4481_vm4 = vcmask 1043456   ;;  %vm860_vm15 = vmand %vm3829_vm1, %vm4049_vm3 }
  0x97   :  { %3512 = vmatprep.subr.msk.mxu0 %vm4468_vm7, %v885_v36  ;;  %vm4480_vm7 = vmmov %vm4479_vm14  ;;  %v4485_v21 = vmov 0  ;;  %vm4494_vm3 = vcmask 31744  }
  0x98   :  { %v826_v43 = vpop.permute.xlu0 %825  ;;  %v828_v57 = vpop.permute.xlu1 %827 }
  0x99   :  { %v837_v62 = vsel %vm4479_vm14, %v824_v52, %v826_v43  ;;  %v838_v11 = vsel %vm4480_vm7, %v826_v43, %v828_v57  ;;  %vm4482_vm14 = vmmov %vm4481_vm4 }
  0x9a   :  { %v886_v30 = vsel %vm862_vm13, %v837_v62, 0.0  ;;  %v887_v13 = vsel %vm4043_vm2, %v838_v11, 0.0  ;;  %vm4068_vm13 = vcmp.le.s32.totalorder %v41_v9, 14  ;;  %vm4487_vm2 = vcmask 31744   ;;  %vm4488_vm1 = vmmov %vm4482_vm14 }
  0x9b   :  { %3515 = vmatprep.subr.msk.mxu1 %vm4481_vm4, %v887_v13  ;;  %v4484_v17 = vsel %vm4068_vm13, 4294967295, %v4483_v17  ;;  %vm4075_vm4 = vcmp.le.s32.totalorder %v39_v14, 14 }
  0x9c   :  { %v819_v10 = vpop.permute.xlu0 %818  ;;  %v830_v55 = vpop.permute.xlu1 %829  ;;  %3516 = vmatpush1.msk.msra.mxu1 %vm4482_vm14, %v886_v30  ;;  %v4486_v21 = vsel %vm4075_vm4, 4294967295, %v4485_v21  ;;  %vm4084_vm14 = vcmp.le.s32.totalorder %v40_v22, 14 }
  0x9d   :  { %v851_v19 = vsel %vm4480_vm7, %v819_v10, %v822_v51  ;;  %3517 = vmatmul.mubr.msk.f32.vlgmr.msra.gmra.mrb[0].mxu1 %vm4487_vm2, %v3511_v50  ;;  %v4490_v18 = vsel %vm4084_vm14, 4294967295, %v4489_v18  ;;  %vm4090_vm7 = vcmp.le.s32.totalorder %v42_v23, 14  ;;  %vm864_vm2 = vmand %vm3872_vm5, %vm4075_vm4  ;;  %vm1230_vm5 = vcmask 7168   ;;  %v3524_v51 = vld [vmem:[%s4413_s1 + $0x18] sm:$0xff] }
  0x9e   :  { %v884_v15 = vsel %vm860_vm15, %v851_v19, 0.0  ;;  %1198 = vmatprep.mubr.f32.mxu1 %v3691_v5  ;;  %v4492_v16 = vsel %vm4090_vm7, 4294967295, %v4491_v16  ;;  %vm866_vm15 = vmand %vm3880_vm6, %vm4068_vm13  ;;  %vm4498_vm6 = vcmask 1043456  }
  0x9f   :  { %3513 = vmatpush1.msk.msra.mxu0 %vm4488_vm1, %v884_v15  ;;  %vm4493_vm1 = vcmask 121856  }
  0xa0   :  { %v839_v9 = vsel %vm4493_vm1, %v828_v57, %v830_v55  ;;  %v832_v14 = vpop.permute.xlu0 %831  ;;  %v834_v22 = vpop.permute.xlu1 %833  ;;  %3514 = vmatmul.mubr.msk.f32.vlgmr.msra.gmra.mrb[0].mxu0 %vm4494_vm3, %v3511_v50  ;;  %vm4495_vm12 = vmmov %vm4493_vm1 }
  0xa1   :  { %v840_v23 = vsel %vm4495_vm12, %v830_v55, %v832_v14  ;;  %vm4496_vm10 = vmmov %vm4493_vm1  ;;  %1127 = vmatprep.mubr.f32.mxu0 %v3691_v5  ;;  %v888_v29 = vsel %vm864_vm2, %v839_v9, 0.0 }
  0xa2   :  { %v841_v24 = vsel %vm4496_vm10, %v832_v14, %v834_v22  ;;  %vm4497_vm0 = vmmov %vm4493_vm1  ;;  %v889_v39 = vsel %vm4084_vm14, %v840_v23, 0.0  ;;  %vm4502_vm10 = vcmask 31744  }
  0xa3   :  { %v842_v25 = vsel %vm4497_vm0, %v834_v22, %v819_v10  ;;  %v890_v20 = vsel %vm866_vm15, %v841_v24, 0.0  ;;  %3518 = vmatprep.subr.msk.mxu0 %vm4498_vm6, %v889_v39  ;;  %vm4499_vm3 = vmmov %vm4498_vm6  ;;  %v3537_v22 = vld [vmem:[%s4413_s1 + $0x20] sm:$0xff] }
  0xa4   :  { %v891_v37 = vsel %vm4090_vm7, %v842_v25, 0.0  ;;  %v1217_v33 = vpop.permute.xlu0 %1216  ;;  %v1219_v34 = vpop.permute.xlu1 %1218  ;;  %vm4500_vm12 = vmmov %vm4499_vm3 }
  0xa5   :  { %3521 = vmatprep.subr.msk.mxu1 %vm4499_vm3, %v891_v37  ;;  %3519 = vmatpush1.msk.msra.mxu0 %vm4500_vm12, %v888_v29  ;;  %vm4501_vm0 = vmmov %vm4499_vm3  ;;  %v1231_v35 = vsel %vm1230_vm5, %v1217_v33, %v1219_v34  ;;  %vm4508_vm12 = vnez %v4455_v63 }
  0xa6   :  { %3522 = vmatpush1.msk.msra.mxu1 %vm4501_vm0, %v890_v20  ;;  %vm4503_vm15 = vmmov %vm4502_vm10  ;;  %v1264_v38 = vsel %vm3904_vm8, %v1231_v35, 0.0  ;;  %v28_v20 = vand.u32 255, %v3853_v27  ;;  %v30_v35 = vand.u32 255, %v3885_v40 }
  0xa7   :  { %3523 = vmatmul.mubr.msk.f32.vlgmr.msra.gmra.mrb[2].mxu1 %vm4502_vm10, %v3511_v50  ;;  %3520 = vmatmul.mubr.msk.f32.vlgmr.msra.gmra.mrb[2].mxu0 %vm4503_vm15, %v3511_v50  ;;  %vm4504_vm2 = vmmov %vm4501_vm0  ;;  %vm4510_vm15 = vnez %v4461_v31 }
  0xa8   :  { %1364 = vmatprep.mubr.f32.mxu0 %v3691_v5  ;;  %1435 = vmatprep.mubr.f32.mxu1 %v3691_v5  ;;  %v1221_v41 = vpop.permute.xlu0 %1220  ;;  %v1223_v42 = vpop.permute.xlu1 %1222  ;;  %vm4505_vm1 = vmmov %vm4501_vm0 }
  0xa9   :  { %3525 = vmatprep.subr.msk.mxu0 %vm4504_vm2, %v1264_v38  ;;  %v1232_v44 = vsel %vm1230_vm5, %v1219_v34, %v1221_v41  ;;  %v1233_v45 = vsel %vm1230_vm5, %v1221_v41, %v1223_v42  ;;  %vm4506_vm6 = vmmov %vm4501_vm0  ;;  %vm4511_vm2 = vnez %v4457_v26 }
  0xaa   :  { %v1265_v46 = vsel %vm3914_vm9, %v1232_v44, 0.0  ;;  %v1266_v47 = vsel %vm3933_vm11, %v1233_v45, 0.0  ;;  %vm4507_vm3 = vmmov %vm4502_vm10 }
  0xab   :  { %3528 = vmatprep.subr.msk.mxu1 %vm4505_vm1, %v1266_v47  ;;  %vm4509_vm10 = vmmov %vm4507_vm3  ;;  %vm4512_vm1 = vnez %v4463_v32 }
  0xac   :  { %v1214_v52 = vpop.permute.xlu0 %1213  ;;  %v1225_v56 = vpop.permute.xlu1 %1224  ;;  %3529 = vmatpush1.msk.msra.mxu1 %vm4506_vm6, %v1265_v46  ;;  %vm4513_vm6 = vnez %v4459_v28 }
  0xad   :  { %v1246_v36 = vsel %vm1230_vm5, %v1214_v52, %v1217_v33  ;;  %3530 = vmatmul.mubr.msk.f32.vlgmr.msra.gmra.mrb[0].mxu1 %vm4507_vm3, %v3524_v51  ;;  %v1234_v57 = vsel %vm1230_vm5, %v1223_v42, %v1225_v56  ;;  %vm4514_vm3 = vmmov %vm4501_vm0 }
  0xae   :  { %v1263_v43 = vsel %vm4508_vm12, %v1246_v36, 0.0  ;;  %1577 = vmatprep.mubr.f32.mxu1 %v3691_v5  ;;  %v1267_v15 = vsel %vm4513_vm6, %v1234_v57, 0.0  ;;  %vm4516_vm12 = vmmov %vm4501_vm0  ;;  %v32_v36 = vand.u32 255, %v3938_v59  ;;  %v3563_v59 = vld [vmem:[%s4413_s1 + $0x30] sm:$0xff] }
  0xaf   :  { %3526 = vmatpush1.msk.msra.mxu0 %vm4501_vm0, %v1263_v43  ;;  %vm4520_vm6 = vmmov %vm4501_vm0 }
  0xb0   :  { %v1227_v62 = vpop.permute.xlu0 %1226  ;;  %v1229_v11 = vpop.permute.xlu1 %1228  ;;  %3527 = vmatmul.mubr.msk.f32.vlgmr.msra.gmra.mrb[0].mxu0 %vm4509_vm10, %v3524_v51  ;;  %vm4515_vm10 = vmmov %vm4501_vm0 }
  0xb1   :  { %v1235_v30 = vsel %vm1230_vm5, %v1225_v56, %v1227_v62  ;;  %v1236_v13 = vsel %vm1230_vm5, %v1227_v62, %v1229_v11  ;;  %v1237_v50 = vsel %vm1230_vm5, %v1229_v11, %v1214_v52  ;;  %1506 = vmatprep.mubr.f32.mxu0 %v3691_v5  ;;  %vm1921_vm5 = vcmask 1039360  }
  0xb2   :  { %v1268_v10 = vsel %vm4510_vm15, %v1235_v30, 0.0  ;;  %v1269_v55 = vsel %vm4511_vm2, %v1236_v13, 0.0  ;;  %v1270_v19 = vsel %vm4512_vm1, %v1237_v50, 0.0  ;;  %vm4517_vm15 = vcmask 31744   ;;  %vm4519_vm1 = vmmov %vm4501_vm0 }
  0xb3   :  { %3531 = vmatprep.subr.msk.mxu0 %vm4514_vm3, %v1268_v10  ;;  %3534 = vmatprep.subr.msk.mxu1 %vm4501_vm0, %v1270_v19  ;;  %vm4518_vm2 = vmmov %vm4517_vm15  ;;  %v34_v62 = vand.u32 255, %v3941_v60 }
  0xb4   :  { %v1908_v9 = vpop.permute.xlu0 %1907  ;;  %v1910_v14 = vpop.permute.xlu1 %1909  ;;  %3532 = vmatpush1.msk.msra.mxu0 %vm4515_vm10, %v1267_v15  ;;  %3535 = vmatpush1.msk.msra.mxu1 %vm4516_vm12, %v1269_v55  ;;  %vm4521_vm3 = vmmov %vm4501_vm0 }
  0xb5   :  { %3533 = vmatmul.mubr.msk.f32.vlgmr.msra.gmra.mrb[2].mxu0 %vm4517_vm15, %v3524_v51  ;;  %3536 = vmatmul.mubr.msk.f32.vlgmr.msra.gmra.mrb[2].mxu1 %vm4518_vm2, %v3524_v51  ;;  %v1923_v23 = vsel %vm1921_vm5, %v1908_v9, %v1910_v14  ;;  %vm4522_vm12 = vmmov %vm4501_vm0 }
  0xb6   :  { %3538 = vmatprep.subr.msk.mxu0 %vm4519_vm1, %v3744_v4  ;;  %3541 = vmatprep.subr.msk.mxu1 %vm4520_vm6, %v3752_v6  ;;  %vm4523_vm15 = vmmov %vm4501_vm0  ;;  %vm4524_vm1 = vnez %v4467_v48  ;;  %vm4525_vm6 = vnez %v4476_v12 }
  0xb7   :  { %3539 = vmatpush1.msk.msra.mxu0 %vm4521_vm3, %v3734_v2  ;;  %1677 = vmatprep.mubr.f32.mxu0 %v3691_v5  ;;  %v1956_v6 = vsel %vm4524_vm1, %v1923_v23, 0.0  ;;  %vm4526_vm0 = vmmov %vm4518_vm2 }
  0xb8   :  { %v1912_v24 = vpop.permute.xlu0 %1911  ;;  %v1914_v25 = vpop.permute.xlu1 %1913  ;;  %3542 = vmatpush1.msk.msra.mxu1 %vm4522_vm12, %v3724_v0  ;;  %1748 = vmatprep.mubr.f32.mxu1 %v3691_v5  ;;  %vm4527_vm10 = vmmov %vm4521_vm3 }
  0xb9   :  { %v1925_v4 = vsel %vm1921_vm5, %v1912_v24, %v1914_v25  ;;  %3544 = vmatprep.subr.msk.mxu0 %vm4523_vm15, %v3763_v8  ;;  %3540 = vmatmul.mubr.msk.f32.vlgmr.msra.gmra.mrb[0].mxu0 %vm4518_vm2, %v3537_v22  ;;  %v1924_v0 = vsel %vm1921_vm5, %v1910_v14, %v1912_v24  ;;  %vm4528_vm12 = vmmov %vm4521_vm3 }
  0xba   :  { %v1958_v2 = vsel %vm4525_vm6, %v1925_v4, 0.0  ;;  %3543 = vmatmul.mubr.msk.f32.vlgmr.msra.gmra.mrb[0].mxu1 %vm4526_vm0, %v3537_v22  ;;  %3545 = vmatpush1.msk.msra.mxu0 %vm4527_vm10, %v3757_v7  ;;  %vm4529_vm15 = vmmov %vm4521_vm3  ;;  %vm4531_vm0 = vnez %v4471_v53  ;;  %vm4532_vm10 = vnez %v4478_v61 }
  0xbb   :  { %3547 = vmatprep.subr.msk.mxu1 %vm4521_vm3, %v3740_v3  ;;  %3551 = vmatprep.subr.msk.mxu0 %vm4528_vm12, %v1956_v6  ;;  %vm4530_vm2 = vmmov %vm4521_vm3  ;;  %v1957_v3 = vsel %vm4531_vm0, %v1924_v0, 0.0  ;;  %vm4533_vm3 = vcmask 31744  }
  0xbc   :  { %3548 = vmatpush1.msk.msra.mxu1 %vm4529_vm15, %v3729_v1  ;;  %v1906_v8 = vpop.permute.xlu0 %1905  ;;  %v1916_v39 = vpop.permute.xlu1 %1915  ;;  %1890 = vmatprep.mubr.f32.mxu1 %v3691_v5  ;;  %vm4534_vm12 = vmmov %vm4533_vm3  ;;  %v3550_v1 = vld [vmem:[%s4413_s1 + $0x28] sm:$0xff] }
  0xbd   :  { %3554 = vmatprep.subr.msk.mxu1 %vm4530_vm2, %v1958_v2  ;;  %v1922_v7 = vsel %vm1921_vm5, %v1906_v8, %v1908_v9  ;;  %1819 = vmatprep.mubr.f32.mxu0 %v3691_v5  ;;  %vm4535_vm15 = vmmov %vm4530_vm2  ;;  %v1926_v27 = vsel %vm1921_vm5, %v1914_v25, %v1916_v39 }
  0xbe   :  { %v1955_v37 = vsel %vm4532_vm10, %v1922_v7, 0.0  ;;  %3549 = vmatmul.mubr.msk.f32.vlgmr.msra.gmra.mrb[2].mxu1 %vm4533_vm3, %v3537_v22  ;;  %3546 = vmatmul.mubr.msk.f32.vlgmr.msra.gmra.mrb[2].mxu0 %vm4534_vm12, %v3537_v22  ;;  %vm4536_vm6 = vmmov %vm4530_vm2  ;;  %vm4211_vm2 = vcmp.lt.s32.totalorder %v28_v20, 240  ;;  %v1959_v40 = vsel %vm4075_vm4, %v1926_v27, 0.0  ;;  %vm4567_vm10 = vcmask 1043456   ;;  %v3576_v20 = vld [vmem:[%s4413_s1 + $0x38] sm:$0xff] }
  0xbf   :  { %3555 = vmatpush1.msk.msra.mxu1 %vm4535_vm15, %v1957_v3  ;;  %3552 = vmatpush1.msk.msra.mxu0 %vm4536_vm6, %v1955_v37  ;;  %vm4539_vm12 = vmmov %vm4533_vm3 }
  0xc0   :  { %v1918_v29 = vpop.permute.xlu0 %1917  ;;  %v1920_v33 = vpop.permute.xlu1 %1919  ;;  %2056 = vmatprep.mubr.f32.mxu0 %v3691_v5  ;;  %2127 = vmatprep.mubr.f32.mxu1 %v3691_v5  ;;  %vm4540_vm15 = vmmov %vm4536_vm6 }
  0xc1   :  { %v1927_v38 = vsel %vm1921_vm5, %v1916_v39, %v1918_v29  ;;  %v1928_v41 = vsel %vm1921_vm5, %v1918_v29, %v1920_v33  ;;  %v1938_v42 = vsel %vm1921_vm5, %v1920_v33, %v1906_v8  ;;  %vm4541_vm5 = vmmov %vm4536_vm6 }
  0xc2   :  { %v1960_v44 = vsel %vm4084_vm14, %v1927_v38, 0.0  ;;  %v1961_v45 = vsel %vm4068_vm13, %v1928_v41, 0.0  ;;  %v1962_v46 = vsel %vm4090_vm7, %v1938_v42, 0.0  ;;  %3553 = vmatmul.mubr.msk.f32.vlgmr.msra.gmra.mrb[0].mxu0 %vm4533_vm3, %v3550_v1  ;;  %3556 = vmatmul.mubr.msk.f32.vlgmr.msra.gmra.mrb[0].mxu1 %vm4539_vm12, %v3550_v1  ;;  %vm2327_vm13 = vmand %vm4211_vm2, %vm3904_vm8  ;;  %vm4237_vm3 = vcmp.lt.s32.totalorder %v30_v35, 240 }
  0xc3   :  { %3557 = vmatprep.subr.msk.mxu0 %vm4540_vm15, %v1960_v44  ;;  %3560 = vmatprep.subr.msk.mxu1 %vm4541_vm5, %v1962_v46  ;;  %vm4542_vm7 = vmmov %vm4541_vm5  ;;  %vm4546_vm12 = vcmask 924672   ;;  %vm4547_vm15 = vcmask 31744  }
  0xc4   :  { %v2287_v47 = vpop.permute.xlu0 %2286  ;;  %v2289_v51 = vpop.permute.xlu1 %2288  ;;  %3558 = vmatpush1.msk.msra.mxu0 %vm4542_vm7, %v1959_v40  ;;  %vm4543_vm6 = vmmov %vm4541_vm5  ;;  %2269 = vmatprep.mubr.f32.mxu1 %v3691_v5 }
  0xc5   :  { %3561 = vmatpush1.msk.msra.mxu1 %vm4543_vm6, %v1961_v45  ;;  %v2302_v56 = vsel %vm4546_vm12, %v2287_v47, %v2289_v51  ;;  %2198 = vmatprep.mubr.f32.mxu0 %v3691_v5  ;;  %vm4548_vm8 = vmmov %vm4547_vm15 }
  0xc6   :  { %v2351_v49 = vsel %vm2327_vm13, %v2302_v56, 0.0  ;;  %3562 = vmatmul.mubr.msk.f32.vlgmr.msra.gmra.mrb[2].mxu1 %vm4547_vm15, %v3550_v1  ;;  %3559 = vmatmul.mubr.msk.f32.vlgmr.msra.gmra.mrb[2].mxu0 %vm4548_vm8, %v3550_v1  ;;  %vm2329_vm7 = vmand %vm4237_vm3, %vm3933_vm11  ;;  %vm4268_vm8 = vcmp.lt.s32.totalorder %v34_v62, 240 }
  0xc7   :  { %3564 = vmatprep.subr.msk.mxu0 %vm4541_vm5, %v2351_v49  ;;  %2451 = vmatprep.mubr.f32.mxu0 %v3691_v5  ;;  %vm4549_vm13 = vmmov %vm4546_vm12 }
  0xc8   :  { %v2291_v43 = vpop.permute.xlu0 %2290  ;;  %v2293_v57 = vpop.permute.xlu1 %2292  ;;  %2522 = vmatprep.mubr.f32.mxu1 %v3691_v5  ;;  %vm4550_vm6 = vmmov %vm4546_vm12  ;;  %vm4263_vm12 = vcmp.lt.s32.totalorder %v32_v36, 240 }
  0xc9   :  { %v2303_v11 = vsel %vm4549_vm13, %v2289_v51, %v2291_v43  ;;  %v2304_v30 = vsel %vm4550_vm6, %v2291_v43, %v2293_v57  ;;  %vm4551_vm11 = vmmov %vm4541_vm5  ;;  %vm4560_vm13 = vnez %v4461_v31  ;;  %v3589_v43 = vld [vmem:[%s4413_s1 + $0x40] sm:$0xff] }
  0xca   :  { %v2352_v58 = vsel %vm3914_vm9, %v2303_v11, 0.0  ;;  %v2353_v13 = vsel %vm2329_vm7, %v2304_v30, 0.0  ;;  %vm4554_vm15 = vmmov %vm4541_vm5  ;;  %vm4558_vm5 = vcmask 31744   ;;  %vm4559_vm7 = vnez %v4455_v63 }
  0xcb   :  { %3567 = vmatprep.subr.msk.mxu1 %vm4551_vm11, %v2353_v13  ;;  %vm4557_vm9 = vmmov %vm4550_vm6 }
  0xcc   :  { %v2285_v60 = vpop.permute.xlu0 %2284  ;;  %v2295_v10 = vpop.permute.xlu1 %2294  ;;  %3568 = vmatpush1.msk.msra.mxu1 %vm4554_vm15, %v2352_v58  ;;  %vm2331_vm6 = vmand %vm4263_vm12, %vm4560_vm13  ;;  %vm4561_vm15 = vnez %v4463_v32 }
  0xcd   :  { %v2301_v54 = vsel %vm4557_vm9, %v2285_v60, %v2287_v47  ;;  %3569 = vmatmul.mubr.msk.f32.vlgmr.msra.gmra.mrb[0].mxu1 %vm4558_vm5, %v3563_v59  ;;  %vm2333_vm4 = vmand %vm4268_vm8, %vm4561_vm15  ;;  %v2305_v15 = vsel %vm4557_vm9, %v2293_v57, %v2295_v10  ;;  %vm2695_vm15 = vcmask 916480  }
  0xce   :  { %v2350_v19 = vsel %vm4559_vm7, %v2301_v54, 0.0  ;;  %2664 = vmatprep.mubr.f32.mxu1 %v3691_v5  ;;  %vm4562_vm7 = vmmov %vm4557_vm9  ;;  %vm4566_vm9 = vnez %v4459_v28 }
  0xcf   :  { %3565 = vmatpush1.msk.msra.mxu0 %vm4551_vm11, %v2350_v19  ;;  %vm4563_vm14 = vmmov %vm4562_vm7  ;;  %vm4565_vm11 = vnez %v4457_v26  ;;  %v2354_v25 = vsel %vm4566_vm9, %v2305_v15, 0.0 }
  0xd0   :  { %v2297_v9 = vpop.permute.xlu0 %2296  ;;  %v2299_v14 = vpop.permute.xlu1 %2298  ;;  %3566 = vmatmul.mubr.msk.f32.vlgmr.msra.gmra.mrb[0].mxu0 %vm4558_vm5, %v3563_v59  ;;  %vm4564_vm13 = vmmov %vm4562_vm7 }
  0xd1   :  { %v2306_v63 = vsel %vm4562_vm7, %v2295_v10, %v2297_v9  ;;  %v2307_v31 = vsel %vm4563_vm14, %v2297_v9, %v2299_v14  ;;  %v2317_v22 = vsel %vm4564_vm13, %v2299_v14, %v2285_v60  ;;  %2593 = vmatprep.mubr.f32.mxu0 %v3691_v5  ;;  %vm4568_vm5 = vmmov %vm4567_vm10 }
  0xd2   :  { %v2355_v23 = vsel %vm2331_vm6, %v2306_v63, 0.0  ;;  %v2356_v32 = vsel %vm4565_vm11, %v2307_v31, 0.0  ;;  %v2357_v24 = vsel %vm2333_vm4, %v2317_v22, 0.0  ;;  %vm4569_vm14 = vmmov %vm4568_vm5  ;;  %vm4571_vm6 = vcmask 31744  }
  0xd3   :  { %3570 = vmatprep.subr.msk.mxu0 %vm4567_vm10, %v2355_v23  ;;  %3573 = vmatprep.subr.msk.mxu1 %vm4568_vm5, %v2357_v24  ;;  %vm4570_vm7 = vmmov %vm4568_vm5 }
  0xd4   :  { %v2682_v4 = vpop.permute.xlu0 %2681  ;;  %v2684_v6 = vpop.permute.xlu1 %2683  ;;  %3571 = vmatpush1.msk.msra.mxu0 %vm4569_vm14, %v2354_v25  ;;  %3574 = vmatpush1.msk.msra.mxu1 %vm4570_vm7, %v2356_v32  ;;  %vm4572_vm13 = vmmov %vm4571_vm6  ;;  %vm3074_vm7 = vcmask 908288  }
  0xd5   :  { %v2697_v2 = vsel %vm2695_vm15, %v2682_v4, %v2684_v6  ;;  %3575 = vmatmul.mubr.msk.f32.vlgmr.msra.gmra.mrb[2].mxu1 %vm4571_vm6, %v3563_v59  ;;  %3572 = vmatmul.mubr.msk.f32.vlgmr.msra.gmra.mrb[2].mxu0 %vm4572_vm13, %v3563_v59  ;;  %vm4573_vm4 = vmmov %vm4568_vm5 }
  0xd6   :  { %v2730_v26 = vsel %vm4211_vm2, %v2697_v2, 0.0  ;;  %2830 = vmatprep.mubr.f32.mxu0 %v3691_v5  ;;  %2901 = vmatprep.mubr.f32.mxu1 %v3691_v5  ;;  %vm4574_vm10 = vmmov %vm4573_vm4 }
  0xd7   :  { %3577 = vmatprep.subr.msk.mxu0 %vm4573_vm4, %v2730_v26  ;;  %vm4575_vm11 = vmmov %vm4573_vm4 }
  0xd8   :  { %v2686_v28 = vpop.permute.xlu0 %2685  ;;  %v2688_v0 = vpop.permute.xlu1 %2687  ;;  %vm4576_vm9 = vmmov %vm4571_vm6 }
  0xd9   :  { %v2699_v8 = vsel %vm2695_vm15, %v2686_v28, %v2688_v0  ;;  %v2698_v7 = vsel %vm2695_vm15, %v2684_v6, %v2686_v28  ;;  %vm4577_vm5 = vmmov %vm4573_vm4 }
  0xda   :  { %v2732_v39 = vsel %vm4237_vm3, %v2699_v8, 0.0  ;;  %vm4578_vm14 = vmmov %vm4571_vm6 }
  0xdb   :  { %3580 = vmatprep.subr.msk.mxu1 %vm4574_vm10, %v2732_v39  ;;  %vm4579_vm6 = vmmov %vm4573_vm4 }
  0xdc   :  { %v2680_v3 = vpop.permute.xlu0 %2679  ;;  %v2690_v37 = vpop.permute.xlu1 %2689  ;;  %3581 = vmatpush1.msk.msra.mxu1 %vm4575_vm11, %v2698_v7  ;;  %vm4580_vm13 = vmmov %vm4573_vm4 }
  0xdd   :  { %v2696_v1 = vsel %vm2695_vm15, %v2680_v3, %v2682_v4  ;;  %3582 = vmatmul.mubr.msk.f32.vlgmr.msra.gmra.mrb[0].mxu1 %vm4576_vm9, %v3576_v20  ;;  %v2700_v42 = vsel %vm2695_vm15, %v2688_v0, %v2690_v37  ;;  %vm3093_vm4 = vmand %vm4211_vm2, %vm4524_vm1  ;;  %vm4584_vm1 = vnez %v4476_v12 }
  0xde   :  { %3578 = vmatpush1.msk.msra.mxu0 %vm4577_vm5, %v2696_v1  ;;  %3043 = vmatprep.mubr.f32.mxu1 %v3691_v5  ;;  %vm4581_vm10 = vmmov %vm4577_vm5 }
  0xdf   :  { %3579 = vmatmul.mubr.msk.f32.vlgmr.msra.gmra.mrb[0].mxu0 %vm4578_vm14, %v3576_v20  ;;  %vm4582_vm11 = vmmov %vm4577_vm5 }
  0xe0   :  { %v2692_v27 = vpop.permute.xlu0 %2691  ;;  %v2694_v29 = vpop.permute.xlu1 %2693  ;;  %2972 = vmatprep.mubr.f32.mxu0 %v3691_v5  ;;  %vm3095_vm2 = vmand %vm4237_vm3, %vm4584_vm1 }
  0xe1   :  { %v2701_v33 = vsel %vm2695_vm15, %v2690_v37, %v2692_v27  ;;  %v2712_v35 = vsel %vm2695_vm15, %v2694_v29, %v2680_v3  ;;  %v2702_v44 = vsel %vm2695_vm15, %v2692_v27, %v2694_v29  ;;  %vm4583_vm15 = vmmov %vm4576_vm9 }
  0xe2   :  { %v2734_v38 = vsel %vm4263_vm12, %v2701_v33, 0.0  ;;  %v2736_v41 = vsel %vm4268_vm8, %v2712_v35, 0.0  ;;  %vm4585_vm14 = vmmov %vm4577_vm5 }
  0xe3   :  { %3583 = vmatprep.subr.msk.mxu0 %vm4579_vm6, %v2734_v38  ;;  %3586 = vmatprep.subr.msk.mxu1 %vm4580_vm13, %v2736_v41  ;;  %vm4586_vm6 = vmmov %vm4577_vm5  ;;  %vm4588_vm13 = vnez %v4478_v61 }
  0xe4   :  { %v3061_v45 = vpop.permute.xlu0 %3060  ;;  %v3063_v46 = vpop.permute.xlu1 %3062  ;;  %3584 = vmatpush1.msk.msra.mxu0 %vm4581_vm10, %v2700_v42  ;;  %3587 = vmatpush1.msk.msra.mxu1 %vm4582_vm11, %v2702_v44  ;;  %vm4587_vm3 = vmmov %vm4576_vm9  ;;  %vm4591_vm11 = vnez %v4492_v16 }
  0xe5   :  { %v3076_v40 = vsel %vm3074_vm7, %v3061_v45, %v3063_v46  ;;  %3588 = vmatmul.mubr.msk.f32.vlgmr.msra.gmra.mrb[2].mxu1 %vm4576_vm9, %v3576_v20  ;;  %3585 = vmatmul.mubr.msk.f32.vlgmr.msra.gmra.mrb[2].mxu0 %vm4583_vm15, %v3576_v20  ;;  %vm3099_vm9 = vmand %vm4268_vm8, %vm4591_vm11 }
  0xe6   :  { %v3117_v47 = vsel %vm3093_vm4, %v3076_v40, 0.0  ;;  %3288 = vmatprep.mubr.f32.mxu1 %v3691_v5  ;;  %3217 = vmatprep.mubr.f32.mxu0 %v3691_v5  ;;  %vm4590_vm4 = vnez %v4490_v18  ;;  %vm4592_vm15 = vmmov %vm4587_vm3 }
  0xe7   :  { %3590 = vmatprep.subr.msk.mxu0 %vm4577_vm5, %v3117_v47  ;;  %vm3097_vm10 = vmand %vm4263_vm12, %vm4590_vm4  ;;  %vm4593_vm12 = vnez %v4486_v21 }
  0xe8   :  { %v3065_v48 = vpop.permute.xlu0 %3064  ;;  %v3067_v34 = vpop.permute.xlu1 %3066 }
  0xe9   :  { %v3077_v51 = vsel %vm3074_vm7, %v3063_v46, %v3065_v48  ;;  %v3078_v56 = vsel %vm3074_vm7, %v3065_v48, %v3067_v34 }
  0xea   :  { %v3118_v49 = vsel %vm4531_vm0, %v3077_v51, 0.0  ;;  %v3119_v36 = vsel %vm3095_vm2, %v3078_v56, 0.0  ;;  %vm4589_vm0 = vmmov %vm4577_vm5  ;;  %vm4594_vm5 = vnez %v4484_v17 }
  0xeb   :  { %3593 = vmatprep.subr.msk.mxu1 %vm4585_vm14, %v3119_v36  ;;  %vm4595_vm8 = vmmov %vm4589_vm0 }
  0xec   :  { %v3059_v12 = vpop.permute.xlu0 %3058  ;;  %v3069_v57 = vpop.permute.xlu1 %3068  ;;  %3594 = vmatpush1.msk.msra.mxu1 %vm4586_vm6, %v3118_v49  ;;  %vm4596_vm1 = vmmov %vm4589_vm0 }
  0xed   :  { %v3075_v52 = vsel %vm3074_vm7, %v3059_v12, %v3061_v45  ;;  %3595 = vmatmul.mubr.msk.f32.vlgmr.msra.gmra.mrb[0].mxu1 %vm4587_vm3, %v3589_v43  ;;  %v3079_v53 = vsel %vm3074_vm7, %v3067_v34, %v3069_v57  ;;  %vm4597_vm2 = vmmov %vm4589_vm0 }
  0xee   :  { %v3116_v62 = vsel %vm4588_vm13, %v3075_v52, 0.0  ;;  %3430 = vmatprep.mubr.f32.mxu1 %v3691_v5  ;;  %v3120_v59 = vsel %vm4593_vm12, %v3079_v53, 0.0  ;;  %vm4598_vm14 = vmmov %vm4589_vm0 }
  0xef   :  { %3591 = vmatpush1.msk.msra.mxu0 %vm4589_vm0, %v3116_v62  ;;  %vm4599_vm6 = vmmov %vm4587_vm3 }
  0xf0   :  { %v3071_v11 = vpop.permute.xlu0 %3070  ;;  %3592 = vmatmul.mubr.msk.f32.vlgmr.msra.gmra.mrb[0].mxu0 %vm4592_vm15, %v3589_v43 }
  0xf1   :  { %v3080_v61 = vsel %vm3074_vm7, %v3069_v57, %v3071_v11  ;;  %v3073_v30 = vpop.permute.xlu1 %3072  ;;  %3359 = vmatprep.mubr.f32.mxu0 %v3691_v5 }
  0xf2   :  { %v3121_v58 = vsel %vm3097_vm10, %v3080_v61, 0.0  ;;  %v3081_v18 = vsel %vm3074_vm7, %v3071_v11, %v3073_v30  ;;  %v3091_v13 = vsel %vm3074_vm7, %v3073_v30, %v3059_v12 }
  0xf3   :  { %v3122_v16 = vsel %vm4594_vm5, %v3081_v18, 0.0  ;;  %v3123_v50 = vsel %vm3099_vm9, %v3091_v13, 0.0  ;;  %3596 = vmatprep.subr.msk.mxu0 %vm4595_vm8, %v3121_v58 }
  0xf4   :  { %3599 = vmatprep.subr.msk.mxu1 %vm4596_vm1, %v3123_v50  ;;  %3597 = vmatpush1.msk.msra.mxu0 %vm4597_vm2, %v3120_v59 }
  0xf5   :  { %3600 = vmatpush1.msk.msra.mxu1 %vm4598_vm14, %v3122_v16  ;;  %3598 = vmatmul.mubr.msk.f32.vlgmr.msra.gmra.mrb[2].mxu0 %vm4599_vm6, %v3589_v43 }
  0xf6   :  { %3601 = vmatmul.mubr.msk.f32.vlgmr.msra.gmra.mrb[2].mxu1 %vm4587_vm3, %v3589_v43 }
 0x105   :  { %v3449_v5 = vpop.permute.xlu0 %3448  ;;  %v3461_v21 = vpop.permute.xlu1 %3460 }
 0x1c0   :  { %v3290_v60 = vpop.f32.mrb[0].mxu1 }
 0x1c1   :  { %v3453_v10 = vmul.f32 %v3449_v5, %v3290_v60  ;;  %v3292_v55 = vpop.f32.mrb[1].mxu1 }
 0x1c2   :  { %v3454_v17 = vmul.f32 %v3449_v5, %v3292_v55 }
 0x1c3   :  { %v3465_v54 = vadd.f32 %v3461_v21, %v3453_v10  ;;  %v3219_v19 = vpop.f32.mrb[0].mxu0 }
 0x1c4   :  { %v3466_v15 = vadd.f32 %v3461_v21, %v3454_v17  ;;  %v3451_v9 = vmul.f32 %v3449_v5, %v3219_v19  ;;  %v3221_v14 = vpop.f32.mrb[1].mxu0 }
 0x1c5   :  { %3602 = vst [vmem:[%s4415_s3 + $0x10] sm:$0xff] %v3465_v54  ;;  %v3452_v63 = vmul.f32 %v3449_v5, %v3221_v14 }
 0x1c6   :  { %3603 = vst [vmem:[%s4415_s3 + $0x18] sm:$0xff] %v3466_v15  ;;  %v3463_v31 = vadd.f32 %v3461_v21, %v3451_v9 }
 0x1c7   :  { %v3464_v22 = vadd.f32 %v3461_v21, %v3452_v63 }
 0x1c8   :  { %3471 = vst [vmem:[%s4415_s3] sm:$0xff] %v3463_v31  ;;  %v3361_v23 = vpop.f32.mrb[2].mxu0 }
 0x1c9   :  { %3472 = vst [vmem:[%s4415_s3 + $0x8] sm:$0xff] %v3464_v22  ;;  %v3455_v32 = vmul.f32 %v3449_v5, %v3361_v23  ;;  %v3432_v24 = vpop.f32.mrb[2].mxu1  ;;  %v3363_v25 = vpop.f32.mrb[3].mxu0 }
 0x1ca   :  { %v3457_v4 = vmul.f32 %v3449_v5, %v3432_v24  ;;  %v3456_v6 = vmul.f32 %v3449_v5, %v3363_v25  ;;  %v3434_v2 = vpop.f32.mrb[3].mxu1 }
 0x1cb   :  { %v3467_v26 = vadd.f32 %v3461_v21, %v3455_v32  ;;  %v3458_v28 = vmul.f32 %v3449_v5, %v3434_v2 }
 0x1cc   :  { %v3469_v0 = vadd.f32 %v3461_v21, %v3457_v4  ;;  %v3468_v8 = vadd.f32 %v3461_v21, %v3456_v6 }
 0x1cd   :  { %3604 = vst [vmem:[%s4415_s3 + $0x20] sm:$0xff] %v3467_v26  ;;  %v3470_v39 = vadd.f32 %v3461_v21, %v3458_v28 }
 0x1ce   :  { %3606 = vst [vmem:[%s4415_s3 + $0x30] sm:$0xff] %v3469_v0  ;;  %3605 = vst [vmem:[%s4415_s3 + $0x28] sm:$0xff] %v3468_v8 }
 0x1cf   :  { %3607 = vst [vmem:[%s4415_s3 + $0x38] sm:$0xff] %v3470_v39 }

</bundles_post_ra>
